<compile_context>
chip_gen: v5e
topology: v5e:2x2
jax: 0.10.0
libtpu: 0.0.40
codegen_flags: <defaults>
</compile_context>

<pallas_src>
import functools

import jax
import jax.numpy as jnp
from jax.experimental import pallas as pl
from jax.experimental.pallas import tpu as pltpu


def _lstm_chunk_kernel(x_ref, wih_ref, whh_ref, b_ref, h0_ref, c0_ref,
                       out_ref, hn_ref, cn_ref,
                       h_scr, c_scr,
                       *, seq_len, unroll):
    """Sequential LSTM recurrence over one chunk of Tc time steps.

    Block shapes seen by the kernel:
      x_ref   : (Tc, B, D_in) bf16  raw input chunk (input projection is fused here)
      wih_ref : (D_in, 4H)    bf16  fused input weights, gate order (i, f, o, g)
      whh_ref : (H, 4H)       bf16  fused hidden weights, same gate order
      b_ref   : (1, 4H)       f32   combined bias b_ih + b_hh
      h0_ref  : (B, H)        f32   initial hidden state for this layer
      c0_ref  : (B, H)        f32   initial cell state for this layer
      out_ref : (Tc, B, H)    bf16  h_t for each step of the chunk
      hn_ref  : (B, H)        f32   final hidden state (resident, written once)
      cn_ref  : (B, H)        f32   final cell state   (resident, written once)
      h_scr/c_scr : VMEM f32 (B, H) recurrent carry across grid steps (chunks)
    """
    chunk = pl.program_id(0)
    tc = x_ref.shape[0]
    hdim = whh_ref.shape[0]

    @pl.when(chunk == 0)
    def _():
        h_scr[...] = h0_ref[...].astype(jnp.float32)
        c_scr[...] = c0_ref[...].astype(jnp.float32)

    w_ih = wih_ref[...]        # (D_in, 4H) bf16 — loaded once per chunk
    w_hh = whh_ref[...]        # (H, 4H)    bf16
    bias = b_ref[...]          # (1, 4H)    f32

    masked = (seq_len % tc) != 0          # static: padded steps exist?

    def step(t, carry):
        h_prev, c_prev = carry            # (B, H) f32 each
        # Two bf16 MXU matmuls with f32 accumulate; the x-projection has no
        # dependence on h, so it hides under the recurrent matmul's latency.
        pre = (jnp.dot(x_ref[t], w_ih, preferred_element_type=jnp.float32)
               + jnp.dot(h_prev.astype(jnp.bfloat16), w_hh,
                         preferred_element_type=jnp.float32)
               + bias)
        # sigmoid(x) = 0.5*tanh(0.5x) + 0.5 : one transcendental per element
        # (EUP relief, esp. on v5e). Gate order (i, f, o, g): sigmoid on the
        # contiguous 3H slice, tanh on the last H slice (free slicing when H is a
        # multiple of 128).
        sig = 0.5 * jnp.tanh(0.5 * pre[:, :3 * hdim]) + 0.5
        g_g = jnp.tanh(pre[:, 3 * hdim:])
        i_g = sig[:, :hdim]
        f_g = sig[:, hdim:2 * hdim]
        o_g = sig[:, 2 * hdim:]
        c_new = f_g * c_prev + i_g * g_g
        h_new = o_g * jnp.tanh(c_new)
        if masked:
            valid = (chunk * tc + t) < seq_len
            h_new = jnp.where(valid, h_new, h_prev)
            c_new = jnp.where(valid, c_new, c_prev)
        out_ref[t] = h_new.astype(out_ref.dtype)
        return h_new, c_new

    h_fin, c_fin = jax.lax.fori_loop(
        0, tc, step, (h_scr[...], c_scr[...]), unroll=unroll)

    h_scr[...] = h_fin
    c_scr[...] = c_fin

    # Final states only matter on the last chunk — skip redundant stores elsewhere.
    @pl.when(chunk == pl.num_programs(0) - 1)
    def _():
        hn_ref[...] = h_fin.astype(hn_ref.dtype)
        cn_ref[...] = c_fin.astype(cn_ref.dtype)


def _pick_time_chunk(T, B, D_in, H, *, budget_bytes=32 * 1024 * 1024, max_chunk=64):
    """Largest power-of-two time chunk whose resident VMEM fits the budget.

    Accounts for default double-buffering of every pipelined operand (bf16 x and
    out streams, bf16 weights) plus the f32 states/scratch."""
    G = 4 * H
    const_bytes = (2 * D_in * G * 2        # W_ih (bf16, 2 buffers)
                   + 2 * H * G * 2         # W_hh (bf16, 2 buffers)
                   + 2 * G * 4             # bias (f32, 2 buffers)
                   + 2 * 2 * B * H * 4     # h0, c0 (f32, 2 buffers each)
                   + 2 * 2 * B * H * 4     # hn, cn outputs
                   + 2 * B * H * 4)        # h/c VMEM scratch
    per_step = 2 * B * D_in * 2 + 2 * B * H * 2   # x row + out row (bf16, 2 buffers)
    tc = 1
    while tc < min(max_chunk, T) and const_bytes + (2 * tc) * per_step <= budget_bytes:
        tc *= 2
    return tc


def _lstm_layer(x_tm, w_ih, w_hh, b, h0, c0):
    """Run one LSTM layer over the full sequence.

    x_tm : (T, B, D_in) time-major input (any float dtype; cast to bf16 here)
    w_ih : (D_in, 4H), w_hh : (H, 4H), b : (1, 4H)   (gate order i, f, o, g)
    h0, c0 : (B, H)
    returns out_tm (T, B, H) bf16, hn (B, H) f32, cn (B, H) f32
    """
    T, B, D_in = x_tm.shape
    H = w_hh.shape[0]
    G = 4 * H

    Tc = _pick_time_chunk(T, B, D_in, H)
    n_chunks = pl.cdiv(T, Tc)
    T_pad = n_chunks * Tc
    if T_pad != T:
        # Pad the time axis; padded steps are masked out of the recurrence inside
        # the kernel, so hn/cn stay correct and the padded output rows are sliced off.
        x_tm = jnp.pad(x_tm, ((0, T_pad - T), (0, 0), (0, 0)))

    unroll = min(8, Tc)   # bounded unroll: overlap without blowing the 64-vreg file
    kernel = functools.partial(_lstm_chunk_kernel, seq_len=T, unroll=unroll)

    grid_spec = pltpu.PrefetchScalarGridSpec(
        num_scalar_prefetch=0,
        grid=(n_chunks,),
        in_specs=[
            pl.BlockSpec((Tc, B, D_in), lambda c: (c, 0, 0)),   # x chunk (bf16)
            pl.BlockSpec((D_in, G),     lambda c: (0, 0)),      # W_ih (constant)
            pl.BlockSpec((H, G),        lambda c: (0, 0)),      # W_hh (constant)
            pl.BlockSpec((1, G),        lambda c: (0, 0)),      # bias (constant)
            pl.BlockSpec((B, H),        lambda c: (0, 0)),      # h0   (constant)
            pl.BlockSpec((B, H),        lambda c: (0, 0)),      # c0   (constant)
        ],
        out_specs=[
            pl.BlockSpec((Tc, B, H), lambda c: (c, 0, 0)),      # per-step outputs
            pl.BlockSpec((B, H),     lambda c: (0, 0)),         # hn (resident)
            pl.BlockSpec((B, H),     lambda c: (0, 0)),         # cn (resident)
        ],
        scratch_shapes=[
            pltpu.VMEM((B, H), jnp.float32),                    # h carry (f32)
            pltpu.VMEM((B, H), jnp.float32),                    # c carry (f32)
        ],
    )

    out_shapes = (
        jax.ShapeDtypeStruct((T_pad, B, H), jnp.bfloat16),
        jax.ShapeDtypeStruct((B, H), jnp.float32),
        jax.ShapeDtypeStruct((B, H), jnp.float32),
    )

    out_pad, hn, cn = pl.pallas_call(
        kernel,
        out_shape=out_shapes,
        grid_spec=grid_spec,
        compiler_params=pltpu.CompilerParams(
            dimension_semantics=("arbitrary",),    # sequential recurrence over chunks
            vmem_limit_bytes=48 * 1024 * 1024,     # above default scoped limit, below
                                                   # v7x's 64 MiB physical VMEM
        ),
    )(x_tm.astype(jnp.bfloat16),
      w_ih.astype(jnp.bfloat16),
      w_hh.astype(jnp.bfloat16),
      b.astype(jnp.float32),
      h0.astype(jnp.float32),
      c0.astype(jnp.float32))

    return out_pad[:T], hn, cn


def init_lstm_params(key, input_size, hidden_size, num_layer):
    """Deterministic parameter init (uniform, PyTorch-style 1/sqrt(H) scale).

    Weights are stored fused and pre-transposed for the kernel:
      w_ih : (D_in, 4H), w_hh : (H, 4H), bias : (1, 4H) = b_ih + b_hh,
    gate order along the 4H dim is (i, f, o, g)."""
    params = []
    bound = 1.0 / (hidden_size ** 0.5)
    for layer in range(num_layer):
        d_in = input_size if layer == 0 else hidden_size
        key, k1, k2, k3, k4 = jax.random.split(key, 5)
        w_ih = jax.random.uniform(k1, (d_in, 4 * hidden_size),
                                  jnp.float32, -bound, bound)
        w_hh = jax.random.uniform(k2, (hidden_size, 4 * hidden_size),
                                  jnp.float32, -bound, bound)
        b_ih = jax.random.uniform(k3, (1, 4 * hidden_size),
                                  jnp.float32, -bound, bound)
        b_hh = jax.random.uniform(k4, (1, 4 * hidden_size),
                                  jnp.float32, -bound, bound)
        params.append((w_ih, w_hh, b_ih + b_hh))
    return params


@jax.jit
def my_lstm_forward(x, h0, c0, params):
    """Equivalent of myLSTM.forward(x, h0, c0).

    x  : (B, T, input_size)   batch_first, like the PyTorch module
    h0 : (num_layer, B, H)
    c0 : (num_layer, B, H)
    returns (out, (hn, cn)) with out (B, T, H) f32, hn/cn (num_layer, B, H) f32
    """
    x_tm = jnp.transpose(x, (1, 0, 2)).astype(jnp.bfloat16)   # (T, B, D) time-major
    hn_list, cn_list = [], []
    layer_in = x_tm
    for layer, (w_ih, w_hh, b) in enumerate(params):
        out_tm, hn_l, cn_l = _lstm_layer(layer_in, w_ih, w_hh, b,
                                         h0[layer], c0[layer])
        hn_list.append(hn_l)
        cn_list.append(cn_l)
        layer_in = out_tm        # bf16 inter-layer activations (half the HBM traffic)

    out = jnp.transpose(layer_in, (1, 0, 2)).astype(jnp.float32)   # (B, T, H) f32
    return out, (jnp.stack(hn_list, axis=0), jnp.stack(cn_list, axis=0))


def _reference_forward(x, h0, c0, params):
    """Pure-JAX f32 reference with identical semantics, for validation."""
    B, T, _ = x.shape
    layer_in = x
    hn_list, cn_list = [], []
    for layer, (w_ih, w_hh, b) in enumerate(params):
        H = w_hh.shape[0]
        h = h0[layer].astype(jnp.float32)
        c = c0[layer].astype(jnp.float32)
        outs = []
        for t in range(T):
            pre = layer_in[:, t, :] @ w_ih + h @ w_hh + b
            i_g = jax.nn.sigmoid(pre[:, :H])
            f_g = jax.nn.sigmoid(pre[:, H:2 * H])
            o_g = jax.nn.sigmoid(pre[:, 2 * H:3 * H])
            g_g = jnp.tanh(pre[:, 3 * H:])
            c = f_g * c + i_g * g_g
            h = o_g * jnp.tanh(c)
            outs.append(h)
        layer_in = jnp.stack(outs, axis=1)
        hn_list.append(h)
        cn_list.append(c)
    return layer_in, (jnp.stack(hn_list, 0), jnp.stack(cn_list, 0))


if __name__ == "__main__":
    # Small shapes consistent with the module's forward.
    batch = 2
    seq = 8
    input_size = 16
    hidden_size = 32
    num_layer = 2

    key = jax.random.PRNGKey(0)
    k_x, k_h, k_c, k_p = jax.random.split(key, 4)

    x = jax.random.normal(k_x, (batch, seq, input_size), jnp.float32)
    h0 = jax.random.normal(k_h, (num_layer, batch, hidden_size), jnp.float32)
    c0 = jax.random.normal(k_c, (num_layer, batch, hidden_size), jnp.float32)

    params = init_lstm_params(k_p, input_size, hidden_size, num_layer)

    out, (hn, cn) = my_lstm_forward(x, h0, c0, params)
    jax.block_until_ready((out, hn, cn))

    assert out.shape == (batch, seq, hidden_size)
    assert hn.shape == (num_layer, batch, hidden_size)
    assert cn.shape == (num_layer, batch, hidden_size)

    # Numerical sanity check against a pure-JAX f32 reference (kernel runs bf16
    # matmuls / bf16 activation streams, so tolerance is bf16-appropriate).
    out_r, (hn_r, cn_r) = _reference_forward(x, h0, c0, params)
    assert jnp.allclose(out, out_r, rtol=2e-2, atol=2e-2)
    assert jnp.allclose(hn, hn_r, rtol=2e-2, atol=2e-2)
    assert jnp.allclose(cn, cn_r, rtol=2e-2, atol=2e-2)

    print("KERNEL_OK")
</pallas_src>

<mosaic_0001>
module attributes {stable_mosaic.version = 11 : i64} {
  func.func @_lstm_chunk_kernel(%arg0: i32, %arg1: memref<8x2x32xbf16, #tpu.memory_space<vmem>>, %arg2: memref<32x128xbf16, #tpu.memory_space<vmem>>, %arg3: memref<32x128xbf16, #tpu.memory_space<vmem>>, %arg4: memref<1x128xf32, #tpu.memory_space<vmem>>, %arg5: memref<2x32xf32, #tpu.memory_space<vmem>>, %arg6: memref<2x32xf32, #tpu.memory_space<vmem>>, %arg7: memref<8x2x32xbf16, #tpu.memory_space<vmem>>, %arg8: memref<2x32xf32, #tpu.memory_space<vmem>>, %arg9: memref<2x32xf32, #tpu.memory_space<vmem>>, %arg10: memref<2x32xf32, #tpu.memory_space<vmem>>, %arg11: memref<2x32xf32, #tpu.memory_space<vmem>>) attributes {dimension_semantics = [#tpu.dimension_semantics<arbitrary>], iteration_bounds = array<i64: 1>, scalar_prefetch = 0 : i64, scratch_operands = 2 : i64, tpu.core_type = #tpu.core_type<tc>, window_params = [{transform_indices = @transform_0, window_bounds = array<i64: 8, 2, 32>}, {pipeline_mode = #tpu.pipeline_mode<synchronous>, transform_indices = @transform_1, window_bounds = array<i64: 32, 128>}, {pipeline_mode = #tpu.pipeline_mode<synchronous>, transform_indices = @transform_2, window_bounds = array<i64: 32, 128>}, {pipeline_mode = #tpu.pipeline_mode<synchronous>, transform_indices = @transform_3, window_bounds = array<i64: 1, 128>}, {pipeline_mode = #tpu.pipeline_mode<synchronous>, transform_indices = @transform_4, window_bounds = array<i64: 2, 32>}, {pipeline_mode = #tpu.pipeline_mode<synchronous>, transform_indices = @transform_5, window_bounds = array<i64: 2, 32>}, {transform_indices = @transform_6, window_bounds = array<i64: 8, 2, 32>}, {pipeline_mode = #tpu.pipeline_mode<synchronous>, transform_indices = @transform_7, window_bounds = array<i64: 2, 32>}, {pipeline_mode = #tpu.pipeline_mode<synchronous>, transform_indices = @transform_8, window_bounds = array<i64: 2, 32>}]} {
    %c0_i32 = arith.constant 0 : i32
    %0 = arith.cmpi eq, %arg0, %c0_i32 : i32
    %1 = arith.extui %0 : i1 to i32
    %c0_i32_0 = arith.constant 0 : i32
    %2 = arith.cmpi ne, %1, %c0_i32_0 : i32
    scf.if %2 {
      %c0_88 = arith.constant 0 : index
      %c0_89 = arith.constant 0 : index
      %269 = vector.load %arg5[%c0_88, %c0_89] : memref<2x32xf32, #tpu.memory_space<vmem>>, vector<2x32xf32>
      %c0_90 = arith.constant 0 : index
      %c0_91 = arith.constant 0 : index
      %270 = vector.load %arg10[%c0_90, %c0_91] : memref<2x32xf32, #tpu.memory_space<vmem>>, vector<2x32xf32>
      tpu.vector_store %arg10[%c0_90, %c0_91], %269 {strides = array<i32>} : memref<2x32xf32, #tpu.memory_space<vmem>>, vector<2x32xf32>,
      %c0_92 = arith.constant 0 : index
      %c0_93 = arith.constant 0 : index
      %271 = vector.load %arg6[%c0_92, %c0_93] : memref<2x32xf32, #tpu.memory_space<vmem>>, vector<2x32xf32>
      %c0_94 = arith.constant 0 : index
      %c0_95 = arith.constant 0 : index
      %272 = vector.load %arg11[%c0_94, %c0_95] : memref<2x32xf32, #tpu.memory_space<vmem>>, vector<2x32xf32>
      tpu.vector_store %arg11[%c0_94, %c0_95], %271 {strides = array<i32>} : memref<2x32xf32, #tpu.memory_space<vmem>>, vector<2x32xf32>,
    } else {
    }
    %c0 = arith.constant 0 : index
    %c0_1 = arith.constant 0 : index
    %3 = vector.load %arg2[%c0, %c0_1] : memref<32x128xbf16, #tpu.memory_space<vmem>>, vector<32x128xbf16>
    %c0_2 = arith.constant 0 : index
    %c0_3 = arith.constant 0 : index
    %4 = vector.load %arg3[%c0_2, %c0_3] : memref<32x128xbf16, #tpu.memory_space<vmem>>, vector<32x128xbf16>
    %c0_4 = arith.constant 0 : index
    %c0_5 = arith.constant 0 : index
    %5 = vector.load %arg4[%c0_4, %c0_5] : memref<1x128xf32, #tpu.memory_space<vmem>>, vector<1x128xf32>
    %c0_6 = arith.constant 0 : index
    %c0_7 = arith.constant 0 : index
    %6 = vector.load %arg10[%c0_6, %c0_7] : memref<2x32xf32, #tpu.memory_space<vmem>>, vector<2x32xf32>
    %c0_8 = arith.constant 0 : index
    %c0_9 = arith.constant 0 : index
    %7 = vector.load %arg11[%c0_8, %c0_9] : memref<2x32xf32, #tpu.memory_space<vmem>>, vector<2x32xf32>
    %c0_i32_10 = arith.constant 0 : i32
    %8 = arith.index_cast %c0_i32_10 : i32 to index
    %c0_11 = arith.constant 0 : index
    %c0_12 = arith.constant 0 : index
    %9 = vector.load %arg1[%8, %c0_11, %c0_12] : memref<8x2x32xbf16, #tpu.memory_space<vmem>>, vector<1x2x32xbf16>
    %10 = vector.shape_cast %9 : vector<1x2x32xbf16> to vector<2x32xbf16>
    %cst = arith.constant dense<0.000000e+00> : vector<2x128xf32>
    %11 = tpu.matmul %10, %3, %cst {dimension_numbers = #tpu.dot_dimension_numbers<[1], [0], [0], [1], [0, 0, 1, 1], [], []>} : vector<2x32xbf16>, vector<32x128xbf16>, vector<2x128xf32> -> vector<2x128xf32>
    %12 = arith.truncf %6 : vector<2x32xf32> to vector<2x32xbf16>
    %cst_13 = arith.constant dense<0.000000e+00> : vector<2x128xf32>
    %13 = tpu.matmul %12, %4, %cst_13 {dimension_numbers = #tpu.dot_dimension_numbers<[1], [0], [0], [1], [0, 0, 1, 1], [], []>} : vector<2x32xbf16>, vector<32x128xbf16>, vector<2x128xf32> -> vector<2x128xf32>
    %14 = arith.addf %11, %13 : vector<2x128xf32>
    %15 = vector.broadcast %5 : vector<1x128xf32> to vector<2x128xf32>
    %16 = arith.addf %14, %15 : vector<2x128xf32>
    %17 = vector.extract_strided_slice %16 {offsets = [0, 0], sizes = [2, 96], strides = [1, 1]} : vector<2x128xf32> to vector<2x96xf32>
    %cst_14 = arith.constant 5.000000e-01 : f32
    %18 = vector.broadcast %cst_14 : f32 to vector<2x96xf32>
    %19 = arith.mulf %18, %17 : vector<2x96xf32>
    %20 = math.tanh %19 : vector<2x96xf32>
    %cst_15 = arith.constant 5.000000e-01 : f32
    %21 = vector.broadcast %cst_15 : f32 to vector<2x96xf32>
    %22 = arith.mulf %21, %20 : vector<2x96xf32>
    %cst_16 = arith.constant 5.000000e-01 : f32
    %23 = vector.broadcast %cst_16 : f32 to vector<2x96xf32>
    %24 = arith.addf %22, %23 : vector<2x96xf32>
    %25 = vector.extract_strided_slice %16 {offsets = [0, 96], sizes = [2, 32], strides = [1, 1]} : vector<2x128xf32> to vector<2x32xf32>
    %26 = math.tanh %25 : vector<2x32xf32>
    %27 = vector.extract_strided_slice %24 {offsets = [0, 0], sizes = [2, 32], strides = [1, 1]} : vector<2x96xf32> to vector<2x32xf32>
    %28 = vector.extract_strided_slice %24 {offsets = [0, 32], sizes = [2, 32], strides = [1, 1]} : vector<2x96xf32> to vector<2x32xf32>
    %29 = vector.extract_strided_slice %24 {offsets = [0, 64], sizes = [2, 32], strides = [1, 1]} : vector<2x96xf32> to vector<2x32xf32>
    %30 = arith.mulf %28, %7 : vector<2x32xf32>
    %31 = arith.mulf %27, %26 : vector<2x32xf32>
    %32 = arith.addf %30, %31 : vector<2x32xf32>
    %33 = math.tanh %32 : vector<2x32xf32>
    %34 = arith.mulf %29, %33 : vector<2x32xf32>
    %35 = arith.truncf %34 : vector<2x32xf32> to vector<2x32xbf16>
    %36 = arith.index_cast %c0_i32_10 : i32 to index
    %c0_17 = arith.constant 0 : index
    %c0_18 = arith.constant 0 : index
    %37 = vector.load %arg7[%36, %c0_17, %c0_18] : memref<8x2x32xbf16, #tpu.memory_space<vmem>>, vector<1x2x32xbf16>
    %38 = vector.shape_cast %37 : vector<1x2x32xbf16> to vector<2x32xbf16>
    %39 = vector.shape_cast %35 : vector<2x32xbf16> to vector<1x2x32xbf16>
    tpu.vector_store %arg7[%36, %c0_17, %c0_18], %39 {strides = array<i32>} : memref<8x2x32xbf16, #tpu.memory_space<vmem>>, vector<1x2x32xbf16>,
    %c1_i32 = arith.constant 1 : i32
    %40 = arith.index_cast %c1_i32 : i32 to index
    %c0_19 = arith.constant 0 : index
    %c0_20 = arith.constant 0 : index
    %41 = vector.load %arg1[%40, %c0_19, %c0_20] : memref<8x2x32xbf16, #tpu.memory_space<vmem>>, vector<1x2x32xbf16>
    %42 = vector.shape_cast %41 : vector<1x2x32xbf16> to vector<2x32xbf16>
    %cst_21 = arith.constant dense<0.000000e+00> : vector<2x128xf32>
    %43 = tpu.matmul %42, %3, %cst_21 {dimension_numbers = #tpu.dot_dimension_numbers<[1], [0], [0], [1], [0, 0, 1, 1], [], []>} : vector<2x32xbf16>, vector<32x128xbf16>, vector<2x128xf32> -> vector<2x128xf32>
    %44 = arith.truncf %34 : vector<2x32xf32> to vector<2x32xbf16>
    %cst_22 = arith.constant dense<0.000000e+00> : vector<2x128xf32>
    %45 = tpu.matmul %44, %4, %cst_22 {dimension_numbers = #tpu.dot_dimension_numbers<[1], [0], [0], [1], [0, 0, 1, 1], [], []>} : vector<2x32xbf16>, vector<32x128xbf16>, vector<2x128xf32> -> vector<2x128xf32>
    %46 = arith.addf %43, %45 : vector<2x128xf32>
    %47 = vector.broadcast %5 : vector<1x128xf32> to vector<2x128xf32>
    %48 = arith.addf %46, %47 : vector<2x128xf32>
    %49 = vector.extract_strided_slice %48 {offsets = [0, 0], sizes = [2, 96], strides = [1, 1]} : vector<2x128xf32> to vector<2x96xf32>
    %cst_23 = arith.constant 5.000000e-01 : f32
    %50 = vector.broadcast %cst_23 : f32 to vector<2x96xf32>
    %51 = arith.mulf %50, %49 : vector<2x96xf32>
    %52 = math.tanh %51 : vector<2x96xf32>
    %cst_24 = arith.constant 5.000000e-01 : f32
    %53 = vector.broadcast %cst_24 : f32 to vector<2x96xf32>
    %54 = arith.mulf %53, %52 : vector<2x96xf32>
    %cst_25 = arith.constant 5.000000e-01 : f32
    %55 = vector.broadcast %cst_25 : f32 to vector<2x96xf32>
    %56 = arith.addf %54, %55 : vector<2x96xf32>
    %57 = vector.extract_strided_slice %48 {offsets = [0, 96], sizes = [2, 32], strides = [1, 1]} : vector<2x128xf32> to vector<2x32xf32>
    %58 = math.tanh %57 : vector<2x32xf32>
    %59 = vector.extract_strided_slice %56 {offsets = [0, 0], sizes = [2, 32], strides = [1, 1]} : vector<2x96xf32> to vector<2x32xf32>
    %60 = vector.extract_strided_slice %56 {offsets = [0, 32], sizes = [2, 32], strides = [1, 1]} : vector<2x96xf32> to vector<2x32xf32>
    %61 = vector.extract_strided_slice %56 {offsets = [0, 64], sizes = [2, 32], strides = [1, 1]} : vector<2x96xf32> to vector<2x32xf32>
    %62 = arith.mulf %60, %32 : vector<2x32xf32>
    %63 = arith.mulf %59, %58 : vector<2x32xf32>
    %64 = arith.addf %62, %63 : vector<2x32xf32>
    %65 = math.tanh %64 : vector<2x32xf32>
    %66 = arith.mulf %61, %65 : vector<2x32xf32>
    %67 = arith.truncf %66 : vector<2x32xf32> to vector<2x32xbf16>
    %68 = arith.index_cast %c1_i32 : i32 to index
    %c0_26 = arith.constant 0 : index
    %c0_27 = arith.constant 0 : index
    %69 = vector.load %arg7[%68, %c0_26, %c0_27] : memref<8x2x32xbf16, #tpu.memory_space<vmem>>, vector<1x2x32xbf16>
    %70 = vector.shape_cast %69 : vector<1x2x32xbf16> to vector<2x32xbf16>
    %71 = vector.shape_cast %67 : vector<2x32xbf16> to vector<1x2x32xbf16>
    tpu.vector_store %arg7[%68, %c0_26, %c0_27], %71 {strides = array<i32>} : memref<8x2x32xbf16, #tpu.memory_space<vmem>>, vector<1x2x32xbf16>,
    %c2_i32 = arith.constant 2 : i32
    %72 = arith.index_cast %c2_i32 : i32 to index
    %c0_28 = arith.constant 0 : index
    %c0_29 = arith.constant 0 : index
    %73 = vector.load %arg1[%72, %c0_28, %c0_29] : memref<8x2x32xbf16, #tpu.memory_space<vmem>>, vector<1x2x32xbf16>
    %74 = vector.shape_cast %73 : vector<1x2x32xbf16> to vector<2x32xbf16>
    %cst_30 = arith.constant dense<0.000000e+00> : vector<2x128xf32>
    %75 = tpu.matmul %74, %3, %cst_30 {dimension_numbers = #tpu.dot_dimension_numbers<[1], [0], [0], [1], [0, 0, 1, 1], [], []>} : vector<2x32xbf16>, vector<32x128xbf16>, vector<2x128xf32> -> vector<2x128xf32>
    %76 = arith.truncf %66 : vector<2x32xf32> to vector<2x32xbf16>
    %cst_31 = arith.constant dense<0.000000e+00> : vector<2x128xf32>
    %77 = tpu.matmul %76, %4, %cst_31 {dimension_numbers = #tpu.dot_dimension_numbers<[1], [0], [0], [1], [0, 0, 1, 1], [], []>} : vector<2x32xbf16>, vector<32x128xbf16>, vector<2x128xf32> -> vector<2x128xf32>
    %78 = arith.addf %75, %77 : vector<2x128xf32>
    %79 = vector.broadcast %5 : vector<1x128xf32> to vector<2x128xf32>
    %80 = arith.addf %78, %79 : vector<2x128xf32>
    %81 = vector.extract_strided_slice %80 {offsets = [0, 0], sizes = [2, 96], strides = [1, 1]} : vector<2x128xf32> to vector<2x96xf32>
    %cst_32 = arith.constant 5.000000e-01 : f32
    %82 = vector.broadcast %cst_32 : f32 to vector<2x96xf32>
    %83 = arith.mulf %82, %81 : vector<2x96xf32>
    %84 = math.tanh %83 : vector<2x96xf32>
    %cst_33 = arith.constant 5.000000e-01 : f32
    %85 = vector.broadcast %cst_33 : f32 to vector<2x96xf32>
    %86 = arith.mulf %85, %84 : vector<2x96xf32>
    %cst_34 = arith.constant 5.000000e-01 : f32
    %87 = vector.broadcast %cst_34 : f32 to vector<2x96xf32>
    %88 = arith.addf %86, %87 : vector<2x96xf32>
    %89 = vector.extract_strided_slice %80 {offsets = [0, 96], sizes = [2, 32], strides = [1, 1]} : vector<2x128xf32> to vector<2x32xf32>
    %90 = math.tanh %89 : vector<2x32xf32>
    %91 = vector.extract_strided_slice %88 {offsets = [0, 0], sizes = [2, 32], strides = [1, 1]} : vector<2x96xf32> to vector<2x32xf32>
    %92 = vector.extract_strided_slice %88 {offsets = [0, 32], sizes = [2, 32], strides = [1, 1]} : vector<2x96xf32> to vector<2x32xf32>
    %93 = vector.extract_strided_slice %88 {offsets = [0, 64], sizes = [2, 32], strides = [1, 1]} : vector<2x96xf32> to vector<2x32xf32>
    %94 = arith.mulf %92, %64 : vector<2x32xf32>
    %95 = arith.mulf %91, %90 : vector<2x32xf32>
    %96 = arith.addf %94, %95 : vector<2x32xf32>
    %97 = math.tanh %96 : vector<2x32xf32>
    %98 = arith.mulf %93, %97 : vector<2x32xf32>
    %99 = arith.truncf %98 : vector<2x32xf32> to vector<2x32xbf16>
    %100 = arith.index_cast %c2_i32 : i32 to index
    %c0_35 = arith.constant 0 : index
    %c0_36 = arith.constant 0 : index
    %101 = vector.load %arg7[%100, %c0_35, %c0_36] : memref<8x2x32xbf16, #tpu.memory_space<vmem>>, vector<1x2x32xbf16>
    %102 = vector.shape_cast %101 : vector<1x2x32xbf16> to vector<2x32xbf16>
    %103 = vector.shape_cast %99 : vector<2x32xbf16> to vector<1x2x32xbf16>
    tpu.vector_store %arg7[%100, %c0_35, %c0_36], %103 {strides = array<i32>} : memref<8x2x32xbf16, #tpu.memory_space<vmem>>, vector<1x2x32xbf16>,
    %c3_i32 = arith.constant 3 : i32
    %104 = arith.index_cast %c3_i32 : i32 to index
    %c0_37 = arith.constant 0 : index
    %c0_38 = arith.constant 0 : index
    %105 = vector.load %arg1[%104, %c0_37, %c0_38] : memref<8x2x32xbf16, #tpu.memory_space<vmem>>, vector<1x2x32xbf16>
    %106 = vector.shape_cast %105 : vector<1x2x32xbf16> to vector<2x32xbf16>
    %cst_39 = arith.constant dense<0.000000e+00> : vector<2x128xf32>
    %107 = tpu.matmul %106, %3, %cst_39 {dimension_numbers = #tpu.dot_dimension_numbers<[1], [0], [0], [1], [0, 0, 1, 1], [], []>} : vector<2x32xbf16>, vector<32x128xbf16>, vector<2x128xf32> -> vector<2x128xf32>
    %108 = arith.truncf %98 : vector<2x32xf32> to vector<2x32xbf16>
    %cst_40 = arith.constant dense<0.000000e+00> : vector<2x128xf32>
    %109 = tpu.matmul %108, %4, %cst_40 {dimension_numbers = #tpu.dot_dimension_numbers<[1], [0], [0], [1], [0, 0, 1, 1], [], []>} : vector<2x32xbf16>, vector<32x128xbf16>, vector<2x128xf32> -> vector<2x128xf32>
    %110 = arith.addf %107, %109 : vector<2x128xf32>
    %111 = vector.broadcast %5 : vector<1x128xf32> to vector<2x128xf32>
    %112 = arith.addf %110, %111 : vector<2x128xf32>
    %113 = vector.extract_strided_slice %112 {offsets = [0, 0], sizes = [2, 96], strides = [1, 1]} : vector<2x128xf32> to vector<2x96xf32>
    %cst_41 = arith.constant 5.000000e-01 : f32
    %114 = vector.broadcast %cst_41 : f32 to vector<2x96xf32>
    %115 = arith.mulf %114, %113 : vector<2x96xf32>
    %116 = math.tanh %115 : vector<2x96xf32>
    %cst_42 = arith.constant 5.000000e-01 : f32
    %117 = vector.broadcast %cst_42 : f32 to vector<2x96xf32>
    %118 = arith.mulf %117, %116 : vector<2x96xf32>
    %cst_43 = arith.constant 5.000000e-01 : f32
    %119 = vector.broadcast %cst_43 : f32 to vector<2x96xf32>
    %120 = arith.addf %118, %119 : vector<2x96xf32>
    %121 = vector.extract_strided_slice %112 {offsets = [0, 96], sizes = [2, 32], strides = [1, 1]} : vector<2x128xf32> to vector<2x32xf32>
    %122 = math.tanh %121 : vector<2x32xf32>
    %123 = vector.extract_strided_slice %120 {offsets = [0, 0], sizes = [2, 32], strides = [1, 1]} : vector<2x96xf32> to vector<2x32xf32>
    %124 = vector.extract_strided_slice %120 {offsets = [0, 32], sizes = [2, 32], strides = [1, 1]} : vector<2x96xf32> to vector<2x32xf32>
    %125 = vector.extract_strided_slice %120 {offsets = [0, 64], sizes = [2, 32], strides = [1, 1]} : vector<2x96xf32> to vector<2x32xf32>
    %126 = arith.mulf %124, %96 : vector<2x32xf32>
    %127 = arith.mulf %123, %122 : vector<2x32xf32>
    %128 = arith.addf %126, %127 : vector<2x32xf32>
    %129 = math.tanh %128 : vector<2x32xf32>
    %130 = arith.mulf %125, %129 : vector<2x32xf32>
    %131 = arith.truncf %130 : vector<2x32xf32> to vector<2x32xbf16>
    %132 = arith.index_cast %c3_i32 : i32 to index
    %c0_44 = arith.constant 0 : index
    %c0_45 = arith.constant 0 : index
    %133 = vector.load %arg7[%132, %c0_44, %c0_45] : memref<8x2x32xbf16, #tpu.memory_space<vmem>>, vector<1x2x32xbf16>
    %134 = vector.shape_cast %133 : vector<1x2x32xbf16> to vector<2x32xbf16>
    %135 = vector.shape_cast %131 : vector<2x32xbf16> to vector<1x2x32xbf16>
    tpu.vector_store %arg7[%132, %c0_44, %c0_45], %135 {strides = array<i32>} : memref<8x2x32xbf16, #tpu.memory_space<vmem>>, vector<1x2x32xbf16>,
    %c4_i32 = arith.constant 4 : i32
    %136 = arith.index_cast %c4_i32 : i32 to index
    %c0_46 = arith.constant 0 : index
    %c0_47 = arith.constant 0 : index
    %137 = vector.load %arg1[%136, %c0_46, %c0_47] : memref<8x2x32xbf16, #tpu.memory_space<vmem>>, vector<1x2x32xbf16>
    %138 = vector.shape_cast %137 : vector<1x2x32xbf16> to vector<2x32xbf16>
    %cst_48 = arith.constant dense<0.000000e+00> : vector<2x128xf32>
    %139 = tpu.matmul %138, %3, %cst_48 {dimension_numbers = #tpu.dot_dimension_numbers<[1], [0], [0], [1], [0, 0, 1, 1], [], []>} : vector<2x32xbf16>, vector<32x128xbf16>, vector<2x128xf32> -> vector<2x128xf32>
    %140 = arith.truncf %130 : vector<2x32xf32> to vector<2x32xbf16>
    %cst_49 = arith.constant dense<0.000000e+00> : vector<2x128xf32>
    %141 = tpu.matmul %140, %4, %cst_49 {dimension_numbers = #tpu.dot_dimension_numbers<[1], [0], [0], [1], [0, 0, 1, 1], [], []>} : vector<2x32xbf16>, vector<32x128xbf16>, vector<2x128xf32> -> vector<2x128xf32>
    %142 = arith.addf %139, %141 : vector<2x128xf32>
    %143 = vector.broadcast %5 : vector<1x128xf32> to vector<2x128xf32>
    %144 = arith.addf %142, %143 : vector<2x128xf32>
    %145 = vector.extract_strided_slice %144 {offsets = [0, 0], sizes = [2, 96], strides = [1, 1]} : vector<2x128xf32> to vector<2x96xf32>
    %cst_50 = arith.constant 5.000000e-01 : f32
    %146 = vector.broadcast %cst_50 : f32 to vector<2x96xf32>
    %147 = arith.mulf %146, %145 : vector<2x96xf32>
    %148 = math.tanh %147 : vector<2x96xf32>
    %cst_51 = arith.constant 5.000000e-01 : f32
    %149 = vector.broadcast %cst_51 : f32 to vector<2x96xf32>
    %150 = arith.mulf %149, %148 : vector<2x96xf32>
    %cst_52 = arith.constant 5.000000e-01 : f32
    %151 = vector.broadcast %cst_52 : f32 to vector<2x96xf32>
    %152 = arith.addf %150, %151 : vector<2x96xf32>
    %153 = vector.extract_strided_slice %144 {offsets = [0, 96], sizes = [2, 32], strides = [1, 1]} : vector<2x128xf32> to vector<2x32xf32>
    %154 = math.tanh %153 : vector<2x32xf32>
    %155 = vector.extract_strided_slice %152 {offsets = [0, 0], sizes = [2, 32], strides = [1, 1]} : vector<2x96xf32> to vector<2x32xf32>
    %156 = vector.extract_strided_slice %152 {offsets = [0, 32], sizes = [2, 32], strides = [1, 1]} : vector<2x96xf32> to vector<2x32xf32>
    %157 = vector.extract_strided_slice %152 {offsets = [0, 64], sizes = [2, 32], strides = [1, 1]} : vector<2x96xf32> to vector<2x32xf32>
    %158 = arith.mulf %156, %128 : vector<2x32xf32>
    %159 = arith.mulf %155, %154 : vector<2x32xf32>
    %160 = arith.addf %158, %159 : vector<2x32xf32>
    %161 = math.tanh %160 : vector<2x32xf32>
    %162 = arith.mulf %157, %161 : vector<2x32xf32>
    %163 = arith.truncf %162 : vector<2x32xf32> to vector<2x32xbf16>
    %164 = arith.index_cast %c4_i32 : i32 to index
    %c0_53 = arith.constant 0 : index
    %c0_54 = arith.constant 0 : index
    %165 = vector.load %arg7[%164, %c0_53, %c0_54] : memref<8x2x32xbf16, #tpu.memory_space<vmem>>, vector<1x2x32xbf16>
    %166 = vector.shape_cast %165 : vector<1x2x32xbf16> to vector<2x32xbf16>
    %167 = vector.shape_cast %163 : vector<2x32xbf16> to vector<1x2x32xbf16>
    tpu.vector_store %arg7[%164, %c0_53, %c0_54], %167 {strides = array<i32>} : memref<8x2x32xbf16, #tpu.memory_space<vmem>>, vector<1x2x32xbf16>,
    %c5_i32 = arith.constant 5 : i32
    %168 = arith.index_cast %c5_i32 : i32 to index
    %c0_55 = arith.constant 0 : index
    %c0_56 = arith.constant 0 : index
    %169 = vector.load %arg1[%168, %c0_55, %c0_56] : memref<8x2x32xbf16, #tpu.memory_space<vmem>>, vector<1x2x32xbf16>
    %170 = vector.shape_cast %169 : vector<1x2x32xbf16> to vector<2x32xbf16>
    %cst_57 = arith.constant dense<0.000000e+00> : vector<2x128xf32>
    %171 = tpu.matmul %170, %3, %cst_57 {dimension_numbers = #tpu.dot_dimension_numbers<[1], [0], [0], [1], [0, 0, 1, 1], [], []>} : vector<2x32xbf16>, vector<32x128xbf16>, vector<2x128xf32> -> vector<2x128xf32>
    %172 = arith.truncf %162 : vector<2x32xf32> to vector<2x32xbf16>
    %cst_58 = arith.constant dense<0.000000e+00> : vector<2x128xf32>
    %173 = tpu.matmul %172, %4, %cst_58 {dimension_numbers = #tpu.dot_dimension_numbers<[1], [0], [0], [1], [0, 0, 1, 1], [], []>} : vector<2x32xbf16>, vector<32x128xbf16>, vector<2x128xf32> -> vector<2x128xf32>
    %174 = arith.addf %171, %173 : vector<2x128xf32>
    %175 = vector.broadcast %5 : vector<1x128xf32> to vector<2x128xf32>
    %176 = arith.addf %174, %175 : vector<2x128xf32>
    %177 = vector.extract_strided_slice %176 {offsets = [0, 0], sizes = [2, 96], strides = [1, 1]} : vector<2x128xf32> to vector<2x96xf32>
    %cst_59 = arith.constant 5.000000e-01 : f32
    %178 = vector.broadcast %cst_59 : f32 to vector<2x96xf32>
    %179 = arith.mulf %178, %177 : vector<2x96xf32>
    %180 = math.tanh %179 : vector<2x96xf32>
    %cst_60 = arith.constant 5.000000e-01 : f32
    %181 = vector.broadcast %cst_60 : f32 to vector<2x96xf32>
    %182 = arith.mulf %181, %180 : vector<2x96xf32>
    %cst_61 = arith.constant 5.000000e-01 : f32
    %183 = vector.broadcast %cst_61 : f32 to vector<2x96xf32>
    %184 = arith.addf %182, %183 : vector<2x96xf32>
    %185 = vector.extract_strided_slice %176 {offsets = [0, 96], sizes = [2, 32], strides = [1, 1]} : vector<2x128xf32> to vector<2x32xf32>
    %186 = math.tanh %185 : vector<2x32xf32>
    %187 = vector.extract_strided_slice %184 {offsets = [0, 0], sizes = [2, 32], strides = [1, 1]} : vector<2x96xf32> to vector<2x32xf32>
    %188 = vector.extract_strided_slice %184 {offsets = [0, 32], sizes = [2, 32], strides = [1, 1]} : vector<2x96xf32> to vector<2x32xf32>
    %189 = vector.extract_strided_slice %184 {offsets = [0, 64], sizes = [2, 32], strides = [1, 1]} : vector<2x96xf32> to vector<2x32xf32>
    %190 = arith.mulf %188, %160 : vector<2x32xf32>
    %191 = arith.mulf %187, %186 : vector<2x32xf32>
    %192 = arith.addf %190, %191 : vector<2x32xf32>
    %193 = math.tanh %192 : vector<2x32xf32>
    %194 = arith.mulf %189, %193 : vector<2x32xf32>
    %195 = arith.truncf %194 : vector<2x32xf32> to vector<2x32xbf16>
    %196 = arith.index_cast %c5_i32 : i32 to index
    %c0_62 = arith.constant 0 : index
    %c0_63 = arith.constant 0 : index
    %197 = vector.load %arg7[%196, %c0_62, %c0_63] : memref<8x2x32xbf16, #tpu.memory_space<vmem>>, vector<1x2x32xbf16>
    %198 = vector.shape_cast %197 : vector<1x2x32xbf16> to vector<2x32xbf16>
    %199 = vector.shape_cast %195 : vector<2x32xbf16> to vector<1x2x32xbf16>
    tpu.vector_store %arg7[%196, %c0_62, %c0_63], %199 {strides = array<i32>} : memref<8x2x32xbf16, #tpu.memory_space<vmem>>, vector<1x2x32xbf16>,
    %c6_i32 = arith.constant 6 : i32
    %200 = arith.index_cast %c6_i32 : i32 to index
    %c0_64 = arith.constant 0 : index
    %c0_65 = arith.constant 0 : index
    %201 = vector.load %arg1[%200, %c0_64, %c0_65] : memref<8x2x32xbf16, #tpu.memory_space<vmem>>, vector<1x2x32xbf16>
    %202 = vector.shape_cast %201 : vector<1x2x32xbf16> to vector<2x32xbf16>
    %cst_66 = arith.constant dense<0.000000e+00> : vector<2x128xf32>
    %203 = tpu.matmul %202, %3, %cst_66 {dimension_numbers = #tpu.dot_dimension_numbers<[1], [0], [0], [1], [0, 0, 1, 1], [], []>} : vector<2x32xbf16>, vector<32x128xbf16>, vector<2x128xf32> -> vector<2x128xf32>
    %204 = arith.truncf %194 : vector<2x32xf32> to vector<2x32xbf16>
    %cst_67 = arith.constant dense<0.000000e+00> : vector<2x128xf32>
    %205 = tpu.matmul %204, %4, %cst_67 {dimension_numbers = #tpu.dot_dimension_numbers<[1], [0], [0], [1], [0, 0, 1, 1], [], []>} : vector<2x32xbf16>, vector<32x128xbf16>, vector<2x128xf32> -> vector<2x128xf32>
    %206 = arith.addf %203, %205 : vector<2x128xf32>
    %207 = vector.broadcast %5 : vector<1x128xf32> to vector<2x128xf32>
    %208 = arith.addf %206, %207 : vector<2x128xf32>
    %209 = vector.extract_strided_slice %208 {offsets = [0, 0], sizes = [2, 96], strides = [1, 1]} : vector<2x128xf32> to vector<2x96xf32>
    %cst_68 = arith.constant 5.000000e-01 : f32
    %210 = vector.broadcast %cst_68 : f32 to vector<2x96xf32>
    %211 = arith.mulf %210, %209 : vector<2x96xf32>
    %212 = math.tanh %211 : vector<2x96xf32>
    %cst_69 = arith.constant 5.000000e-01 : f32
    %213 = vector.broadcast %cst_69 : f32 to vector<2x96xf32>
    %214 = arith.mulf %213, %212 : vector<2x96xf32>
    %cst_70 = arith.constant 5.000000e-01 : f32
    %215 = vector.broadcast %cst_70 : f32 to vector<2x96xf32>
    %216 = arith.addf %214, %215 : vector<2x96xf32>
    %217 = vector.extract_strided_slice %208 {offsets = [0, 96], sizes = [2, 32], strides = [1, 1]} : vector<2x128xf32> to vector<2x32xf32>
    %218 = math.tanh %217 : vector<2x32xf32>
    %219 = vector.extract_strided_slice %216 {offsets = [0, 0], sizes = [2, 32], strides = [1, 1]} : vector<2x96xf32> to vector<2x32xf32>
    %220 = vector.extract_strided_slice %216 {offsets = [0, 32], sizes = [2, 32], strides = [1, 1]} : vector<2x96xf32> to vector<2x32xf32>
    %221 = vector.extract_strided_slice %216 {offsets = [0, 64], sizes = [2, 32], strides = [1, 1]} : vector<2x96xf32> to vector<2x32xf32>
    %222 = arith.mulf %220, %192 : vector<2x32xf32>
    %223 = arith.mulf %219, %218 : vector<2x32xf32>
    %224 = arith.addf %222, %223 : vector<2x32xf32>
    %225 = math.tanh %224 : vector<2x32xf32>
    %226 = arith.mulf %221, %225 : vector<2x32xf32>
    %227 = arith.truncf %226 : vector<2x32xf32> to vector<2x32xbf16>
    %228 = arith.index_cast %c6_i32 : i32 to index
    %c0_71 = arith.constant 0 : index
    %c0_72 = arith.constant 0 : index
    %229 = vector.load %arg7[%228, %c0_71, %c0_72] : memref<8x2x32xbf16, #tpu.memory_space<vmem>>, vector<1x2x32xbf16>
    %230 = vector.shape_cast %229 : vector<1x2x32xbf16> to vector<2x32xbf16>
    %231 = vector.shape_cast %227 : vector<2x32xbf16> to vector<1x2x32xbf16>
    tpu.vector_store %arg7[%228, %c0_71, %c0_72], %231 {strides = array<i32>} : memref<8x2x32xbf16, #tpu.memory_space<vmem>>, vector<1x2x32xbf16>,
    %c7_i32 = arith.constant 7 : i32
    %232 = arith.index_cast %c7_i32 : i32 to index
    %c0_73 = arith.constant 0 : index
    %c0_74 = arith.constant 0 : index
    %233 = vector.load %arg1[%232, %c0_73, %c0_74] : memref<8x2x32xbf16, #tpu.memory_space<vmem>>, vector<1x2x32xbf16>
    %234 = vector.shape_cast %233 : vector<1x2x32xbf16> to vector<2x32xbf16>
    %cst_75 = arith.constant dense<0.000000e+00> : vector<2x128xf32>
    %235 = tpu.matmul %234, %3, %cst_75 {dimension_numbers = #tpu.dot_dimension_numbers<[1], [0], [0], [1], [0, 0, 1, 1], [], []>} : vector<2x32xbf16>, vector<32x128xbf16>, vector<2x128xf32> -> vector<2x128xf32>
    %236 = arith.truncf %226 : vector<2x32xf32> to vector<2x32xbf16>
    %cst_76 = arith.constant dense<0.000000e+00> : vector<2x128xf32>
    %237 = tpu.matmul %236, %4, %cst_76 {dimension_numbers = #tpu.dot_dimension_numbers<[1], [0], [0], [1], [0, 0, 1, 1], [], []>} : vector<2x32xbf16>, vector<32x128xbf16>, vector<2x128xf32> -> vector<2x128xf32>
    %238 = arith.addf %235, %237 : vector<2x128xf32>
    %239 = vector.broadcast %5 : vector<1x128xf32> to vector<2x128xf32>
    %240 = arith.addf %238, %239 : vector<2x128xf32>
    %241 = vector.extract_strided_slice %240 {offsets = [0, 0], sizes = [2, 96], strides = [1, 1]} : vector<2x128xf32> to vector<2x96xf32>
    %cst_77 = arith.constant 5.000000e-01 : f32
    %242 = vector.broadcast %cst_77 : f32 to vector<2x96xf32>
    %243 = arith.mulf %242, %241 : vector<2x96xf32>
    %244 = math.tanh %243 : vector<2x96xf32>
    %cst_78 = arith.constant 5.000000e-01 : f32
    %245 = vector.broadcast %cst_78 : f32 to vector<2x96xf32>
    %246 = arith.mulf %245, %244 : vector<2x96xf32>
    %cst_79 = arith.constant 5.000000e-01 : f32
    %247 = vector.broadcast %cst_79 : f32 to vector<2x96xf32>
    %248 = arith.addf %246, %247 : vector<2x96xf32>
    %249 = vector.extract_strided_slice %240 {offsets = [0, 96], sizes = [2, 32], strides = [1, 1]} : vector<2x128xf32> to vector<2x32xf32>
    %250 = math.tanh %249 : vector<2x32xf32>
    %251 = vector.extract_strided_slice %248 {offsets = [0, 0], sizes = [2, 32], strides = [1, 1]} : vector<2x96xf32> to vector<2x32xf32>
    %252 = vector.extract_strided_slice %248 {offsets = [0, 32], sizes = [2, 32], strides = [1, 1]} : vector<2x96xf32> to vector<2x32xf32>
    %253 = vector.extract_strided_slice %248 {offsets = [0, 64], sizes = [2, 32], strides = [1, 1]} : vector<2x96xf32> to vector<2x32xf32>
    %254 = arith.mulf %252, %224 : vector<2x32xf32>
    %255 = arith.mulf %251, %250 : vector<2x32xf32>
    %256 = arith.addf %254, %255 : vector<2x32xf32>
    %257 = math.tanh %256 : vector<2x32xf32>
    %258 = arith.mulf %253, %257 : vector<2x32xf32>
    %259 = arith.truncf %258 : vector<2x32xf32> to vector<2x32xbf16>
    %260 = arith.index_cast %c7_i32 : i32 to index
    %c0_80 = arith.constant 0 : index
    %c0_81 = arith.constant 0 : index
    %261 = vector.load %arg7[%260, %c0_80, %c0_81] : memref<8x2x32xbf16, #tpu.memory_space<vmem>>, vector<1x2x32xbf16>
    %262 = vector.shape_cast %261 : vector<1x2x32xbf16> to vector<2x32xbf16>
    %263 = vector.shape_cast %259 : vector<2x32xbf16> to vector<1x2x32xbf16>
    tpu.vector_store %arg7[%260, %c0_80, %c0_81], %263 {strides = array<i32>} : memref<8x2x32xbf16, #tpu.memory_space<vmem>>, vector<1x2x32xbf16>,
    %c8_i32 = arith.constant 8 : i32
    %c0_82 = arith.constant 0 : index
    %c0_83 = arith.constant 0 : index
    %264 = vector.load %arg10[%c0_82, %c0_83] : memref<2x32xf32, #tpu.memory_space<vmem>>, vector<2x32xf32>
    tpu.vector_store %arg10[%c0_82, %c0_83], %258 {strides = array<i32>} : memref<2x32xf32, #tpu.memory_space<vmem>>, vector<2x32xf32>,
    %c0_84 = arith.constant 0 : index
    %c0_85 = arith.constant 0 : index
    %265 = vector.load %arg11[%c0_84, %c0_85] : memref<2x32xf32, #tpu.memory_space<vmem>>, vector<2x32xf32>
    tpu.vector_store %arg11[%c0_84, %c0_85], %256 {strides = array<i32>} : memref<2x32xf32, #tpu.memory_space<vmem>>, vector<2x32xf32>,
    %c0_i32_86 = arith.constant 0 : i32
    %266 = arith.cmpi eq, %arg0, %c0_i32_86 : i32
    %267 = arith.extui %266 : i1 to i32
    %c0_i32_87 = arith.constant 0 : i32
    %268 = arith.cmpi ne, %267, %c0_i32_87 : i32
    scf.if %268 {
      %c0_88 = arith.constant 0 : index
      %c0_89 = arith.constant 0 : index
      %269 = vector.load %arg8[%c0_88, %c0_89] : memref<2x32xf32, #tpu.memory_space<vmem>>, vector<2x32xf32>
      tpu.vector_store %arg8[%c0_88, %c0_89], %258 {strides = array<i32>} : memref<2x32xf32, #tpu.memory_space<vmem>>, vector<2x32xf32>,
      %c0_90 = arith.constant 0 : index
      %c0_91 = arith.constant 0 : index
      %270 = vector.load %arg9[%c0_90, %c0_91] : memref<2x32xf32, #tpu.memory_space<vmem>>, vector<2x32xf32>
      tpu.vector_store %arg9[%c0_90, %c0_91], %256 {strides = array<i32>} : memref<2x32xf32, #tpu.memory_space<vmem>>, vector<2x32xf32>,
    } else {
    }
    return
  }
  func.func @transform_0(%arg0: i32) -> (i32, i32, i32) {
    %c0_i32 = arith.constant 0 : i32
    %c0_i32_0 = arith.constant 0 : i32
    %c0_i32_1 = arith.constant 0 : i32
    return %arg0, %c0_i32, %c0_i32_0 : i32, i32, i32
  }
  func.func @transform_1(%arg0: i32) -> (i32, i32) {
    %c0_i32 = arith.constant 0 : i32
    %c0_i32_0 = arith.constant 0 : i32
    %c0_i32_1 = arith.constant 0 : i32
    return %c0_i32, %c0_i32_0 : i32, i32
  }
  func.func @transform_2(%arg0: i32) -> (i32, i32) {
    %c0_i32 = arith.constant 0 : i32
    %c0_i32_0 = arith.constant 0 : i32
    %c0_i32_1 = arith.constant 0 : i32
    return %c0_i32, %c0_i32_0 : i32, i32
  }
  func.func @transform_3(%arg0: i32) -> (i32, i32) {
    %c0_i32 = arith.constant 0 : i32
    %c0_i32_0 = arith.constant 0 : i32
    %c0_i32_1 = arith.constant 0 : i32
    return %c0_i32, %c0_i32_0 : i32, i32
  }
  func.func @transform_4(%arg0: i32) -> (i32, i32) {
    %c0_i32 = arith.constant 0 : i32
    %c0_i32_0 = arith.constant 0 : i32
    %c0_i32_1 = arith.constant 0 : i32
    return %c0_i32, %c0_i32_0 : i32, i32
  }
  func.func @transform_5(%arg0: i32) -> (i32, i32) {
    %c0_i32 = arith.constant 0 : i32
    %c0_i32_0 = arith.constant 0 : i32
    %c0_i32_1 = arith.constant 0 : i32
    return %c0_i32, %c0_i32_0 : i32, i32
  }
  func.func @transform_6(%arg0: i32) -> (i32, i32, i32) {
    %c0_i32 = arith.constant 0 : i32
    %c0_i32_0 = arith.constant 0 : i32
    %c0_i32_1 = arith.constant 0 : i32
    return %arg0, %c0_i32, %c0_i32_0 : i32, i32, i32
  }
  func.func @transform_7(%arg0: i32) -> (i32, i32) {
    %c0_i32 = arith.constant 0 : i32
    %c0_i32_0 = arith.constant 0 : i32
    %c0_i32_1 = arith.constant 0 : i32
    return %c0_i32, %c0_i32_0 : i32, i32
  }
  func.func @transform_8(%arg0: i32) -> (i32, i32) {
    %c0_i32 = arith.constant 0 : i32
    %c0_i32_0 = arith.constant 0 : i32
    %c0_i32_1 = arith.constant 0 : i32
    return %c0_i32, %c0_i32_0 : i32, i32
  }
}

module attributes {stable_mosaic.version = 11 : i64} {
  func.func @_lstm_chunk_kernel(%arg0: i32, %arg1: memref<8x2x16xbf16, #tpu.memory_space<vmem>>, %arg2: memref<16x128xbf16, #tpu.memory_space<vmem>>, %arg3: memref<32x128xbf16, #tpu.memory_space<vmem>>, %arg4: memref<1x128xf32, #tpu.memory_space<vmem>>, %arg5: memref<2x32xf32, #tpu.memory_space<vmem>>, %arg6: memref<2x32xf32, #tpu.memory_space<vmem>>, %arg7: memref<8x2x32xbf16, #tpu.memory_space<vmem>>, %arg8: memref<2x32xf32, #tpu.memory_space<vmem>>, %arg9: memref<2x32xf32, #tpu.memory_space<vmem>>, %arg10: memref<2x32xf32, #tpu.memory_space<vmem>>, %arg11: memref<2x32xf32, #tpu.memory_space<vmem>>) attributes {dimension_semantics = [#tpu.dimension_semantics<arbitrary>], iteration_bounds = array<i64: 1>, scalar_prefetch = 0 : i64, scratch_operands = 2 : i64, tpu.core_type = #tpu.core_type<tc>, window_params = [{transform_indices = @transform_0, window_bounds = array<i64: 8, 2, 16>}, {pipeline_mode = #tpu.pipeline_mode<synchronous>, transform_indices = @transform_1, window_bounds = array<i64: 16, 128>}, {pipeline_mode = #tpu.pipeline_mode<synchronous>, transform_indices = @transform_2, window_bounds = array<i64: 32, 128>}, {pipeline_mode = #tpu.pipeline_mode<synchronous>, transform_indices = @transform_3, window_bounds = array<i64: 1, 128>}, {pipeline_mode = #tpu.pipeline_mode<synchronous>, transform_indices = @transform_4, window_bounds = array<i64: 2, 32>}, {pipeline_mode = #tpu.pipeline_mode<synchronous>, transform_indices = @transform_5, window_bounds = array<i64: 2, 32>}, {transform_indices = @transform_6, window_bounds = array<i64: 8, 2, 32>}, {pipeline_mode = #tpu.pipeline_mode<synchronous>, transform_indices = @transform_7, window_bounds = array<i64: 2, 32>}, {pipeline_mode = #tpu.pipeline_mode<synchronous>, transform_indices = @transform_8, window_bounds = array<i64: 2, 32>}]} {
    %c0_i32 = arith.constant 0 : i32
    %0 = arith.cmpi eq, %arg0, %c0_i32 : i32
    %1 = arith.extui %0 : i1 to i32
    %c0_i32_0 = arith.constant 0 : i32
    %2 = arith.cmpi ne, %1, %c0_i32_0 : i32
    scf.if %2 {
      %c0_88 = arith.constant 0 : index
      %c0_89 = arith.constant 0 : index
      %269 = vector.load %arg5[%c0_88, %c0_89] : memref<2x32xf32, #tpu.memory_space<vmem>>, vector<2x32xf32>
      %c0_90 = arith.constant 0 : index
      %c0_91 = arith.constant 0 : index
      %270 = vector.load %arg10[%c0_90, %c0_91] : memref<2x32xf32, #tpu.memory_space<vmem>>, vector<2x32xf32>
      tpu.vector_store %arg10[%c0_90, %c0_91], %269 {strides = array<i32>} : memref<2x32xf32, #tpu.memory_space<vmem>>, vector<2x32xf32>,
      %c0_92 = arith.constant 0 : index
      %c0_93 = arith.constant 0 : index
      %271 = vector.load %arg6[%c0_92, %c0_93] : memref<2x32xf32, #tpu.memory_space<vmem>>, vector<2x32xf32>
      %c0_94 = arith.constant 0 : index
      %c0_95 = arith.constant 0 : index
      %272 = vector.load %arg11[%c0_94, %c0_95] : memref<2x32xf32, #tpu.memory_space<vmem>>, vector<2x32xf32>
      tpu.vector_store %arg11[%c0_94, %c0_95], %271 {strides = array<i32>} : memref<2x32xf32, #tpu.memory_space<vmem>>, vector<2x32xf32>,
    } else {
    }
    %c0 = arith.constant 0 : index
    %c0_1 = arith.constant 0 : index
    %3 = vector.load %arg2[%c0, %c0_1] : memref<16x128xbf16, #tpu.memory_space<vmem>>, vector<16x128xbf16>
    %c0_2 = arith.constant 0 : index
    %c0_3 = arith.constant 0 : index
    %4 = vector.load %arg3[%c0_2, %c0_3] : memref<32x128xbf16, #tpu.memory_space<vmem>>, vector<32x128xbf16>
    %c0_4 = arith.constant 0 : index
    %c0_5 = arith.constant 0 : index
    %5 = vector.load %arg4[%c0_4, %c0_5] : memref<1x128xf32, #tpu.memory_space<vmem>>, vector<1x128xf32>
    %c0_6 = arith.constant 0 : index
    %c0_7 = arith.constant 0 : index
    %6 = vector.load %arg10[%c0_6, %c0_7] : memref<2x32xf32, #tpu.memory_space<vmem>>, vector<2x32xf32>
    %c0_8 = arith.constant 0 : index
    %c0_9 = arith.constant 0 : index
    %7 = vector.load %arg11[%c0_8, %c0_9] : memref<2x32xf32, #tpu.memory_space<vmem>>, vector<2x32xf32>
    %c0_i32_10 = arith.constant 0 : i32
    %8 = arith.index_cast %c0_i32_10 : i32 to index
    %c0_11 = arith.constant 0 : index
    %c0_12 = arith.constant 0 : index
    %9 = vector.load %arg1[%8, %c0_11, %c0_12] : memref<8x2x16xbf16, #tpu.memory_space<vmem>>, vector<1x2x16xbf16>
    %10 = vector.shape_cast %9 : vector<1x2x16xbf16> to vector<2x16xbf16>
    %cst = arith.constant dense<0.000000e+00> : vector<2x128xf32>
    %11 = tpu.matmul %10, %3, %cst {dimension_numbers = #tpu.dot_dimension_numbers<[1], [0], [0], [1], [0, 0, 1, 1], [], []>} : vector<2x16xbf16>, vector<16x128xbf16>, vector<2x128xf32> -> vector<2x128xf32>
    %12 = arith.truncf %6 : vector<2x32xf32> to vector<2x32xbf16>
    %cst_13 = arith.constant dense<0.000000e+00> : vector<2x128xf32>
    %13 = tpu.matmul %12, %4, %cst_13 {dimension_numbers = #tpu.dot_dimension_numbers<[1], [0], [0], [1], [0, 0, 1, 1], [], []>} : vector<2x32xbf16>, vector<32x128xbf16>, vector<2x128xf32> -> vector<2x128xf32>
    %14 = arith.addf %11, %13 : vector<2x128xf32>
    %15 = vector.broadcast %5 : vector<1x128xf32> to vector<2x128xf32>
    %16 = arith.addf %14, %15 : vector<2x128xf32>
    %17 = vector.extract_strided_slice %16 {offsets = [0, 0], sizes = [2, 96], strides = [1, 1]} : vector<2x128xf32> to vector<2x96xf32>
    %cst_14 = arith.constant 5.000000e-01 : f32
    %18 = vector.broadcast %cst_14 : f32 to vector<2x96xf32>
    %19 = arith.mulf %18, %17 : vector<2x96xf32>
    %20 = math.tanh %19 : vector<2x96xf32>
    %cst_15 = arith.constant 5.000000e-01 : f32
    %21 = vector.broadcast %cst_15 : f32 to vector<2x96xf32>
    %22 = arith.mulf %21, %20 : vector<2x96xf32>
    %cst_16 = arith.constant 5.000000e-01 : f32
    %23 = vector.broadcast %cst_16 : f32 to vector<2x96xf32>
    %24 = arith.addf %22, %23 : vector<2x96xf32>
    %25 = vector.extract_strided_slice %16 {offsets = [0, 96], sizes = [2, 32], strides = [1, 1]} : vector<2x128xf32> to vector<2x32xf32>
    %26 = math.tanh %25 : vector<2x32xf32>
    %27 = vector.extract_strided_slice %24 {offsets = [0, 0], sizes = [2, 32], strides = [1, 1]} : vector<2x96xf32> to vector<2x32xf32>
    %28 = vector.extract_strided_slice %24 {offsets = [0, 32], sizes = [2, 32], strides = [1, 1]} : vector<2x96xf32> to vector<2x32xf32>
    %29 = vector.extract_strided_slice %24 {offsets = [0, 64], sizes = [2, 32], strides = [1, 1]} : vector<2x96xf32> to vector<2x32xf32>
    %30 = arith.mulf %28, %7 : vector<2x32xf32>
    %31 = arith.mulf %27, %26 : vector<2x32xf32>
    %32 = arith.addf %30, %31 : vector<2x32xf32>
    %33 = math.tanh %32 : vector<2x32xf32>
    %34 = arith.mulf %29, %33 : vector<2x32xf32>
    %35 = arith.truncf %34 : vector<2x32xf32> to vector<2x32xbf16>
    %36 = arith.index_cast %c0_i32_10 : i32 to index
    %c0_17 = arith.constant 0 : index
    %c0_18 = arith.constant 0 : index
    %37 = vector.load %arg7[%36, %c0_17, %c0_18] : memref<8x2x32xbf16, #tpu.memory_space<vmem>>, vector<1x2x32xbf16>
    %38 = vector.shape_cast %37 : vector<1x2x32xbf16> to vector<2x32xbf16>
    %39 = vector.shape_cast %35 : vector<2x32xbf16> to vector<1x2x32xbf16>
    tpu.vector_store %arg7[%36, %c0_17, %c0_18], %39 {strides = array<i32>} : memref<8x2x32xbf16, #tpu.memory_space<vmem>>, vector<1x2x32xbf16>,
    %c1_i32 = arith.constant 1 : i32
    %40 = arith.index_cast %c1_i32 : i32 to index
    %c0_19 = arith.constant 0 : index
    %c0_20 = arith.constant 0 : index
    %41 = vector.load %arg1[%40, %c0_19, %c0_20] : memref<8x2x16xbf16, #tpu.memory_space<vmem>>, vector<1x2x16xbf16>
    %42 = vector.shape_cast %41 : vector<1x2x16xbf16> to vector<2x16xbf16>
    %cst_21 = arith.constant dense<0.000000e+00> : vector<2x128xf32>
    %43 = tpu.matmul %42, %3, %cst_21 {dimension_numbers = #tpu.dot_dimension_numbers<[1], [0], [0], [1], [0, 0, 1, 1], [], []>} : vector<2x16xbf16>, vector<16x128xbf16>, vector<2x128xf32> -> vector<2x128xf32>
    %44 = arith.truncf %34 : vector<2x32xf32> to vector<2x32xbf16>
    %cst_22 = arith.constant dense<0.000000e+00> : vector<2x128xf32>
    %45 = tpu.matmul %44, %4, %cst_22 {dimension_numbers = #tpu.dot_dimension_numbers<[1], [0], [0], [1], [0, 0, 1, 1], [], []>} : vector<2x32xbf16>, vector<32x128xbf16>, vector<2x128xf32> -> vector<2x128xf32>
    %46 = arith.addf %43, %45 : vector<2x128xf32>
    %47 = vector.broadcast %5 : vector<1x128xf32> to vector<2x128xf32>
    %48 = arith.addf %46, %47 : vector<2x128xf32>
    %49 = vector.extract_strided_slice %48 {offsets = [0, 0], sizes = [2, 96], strides = [1, 1]} : vector<2x128xf32> to vector<2x96xf32>
    %cst_23 = arith.constant 5.000000e-01 : f32
    %50 = vector.broadcast %cst_23 : f32 to vector<2x96xf32>
    %51 = arith.mulf %50, %49 : vector<2x96xf32>
    %52 = math.tanh %51 : vector<2x96xf32>
    %cst_24 = arith.constant 5.000000e-01 : f32
    %53 = vector.broadcast %cst_24 : f32 to vector<2x96xf32>
    %54 = arith.mulf %53, %52 : vector<2x96xf32>
    %cst_25 = arith.constant 5.000000e-01 : f32
    %55 = vector.broadcast %cst_25 : f32 to vector<2x96xf32>
    %56 = arith.addf %54, %55 : vector<2x96xf32>
    %57 = vector.extract_strided_slice %48 {offsets = [0, 96], sizes = [2, 32], strides = [1, 1]} : vector<2x128xf32> to vector<2x32xf32>
    %58 = math.tanh %57 : vector<2x32xf32>
    %59 = vector.extract_strided_slice %56 {offsets = [0, 0], sizes = [2, 32], strides = [1, 1]} : vector<2x96xf32> to vector<2x32xf32>
    %60 = vector.extract_strided_slice %56 {offsets = [0, 32], sizes = [2, 32], strides = [1, 1]} : vector<2x96xf32> to vector<2x32xf32>
    %61 = vector.extract_strided_slice %56 {offsets = [0, 64], sizes = [2, 32], strides = [1, 1]} : vector<2x96xf32> to vector<2x32xf32>
    %62 = arith.mulf %60, %32 : vector<2x32xf32>
    %63 = arith.mulf %59, %58 : vector<2x32xf32>
    %64 = arith.addf %62, %63 : vector<2x32xf32>
    %65 = math.tanh %64 : vector<2x32xf32>
    %66 = arith.mulf %61, %65 : vector<2x32xf32>
    %67 = arith.truncf %66 : vector<2x32xf32> to vector<2x32xbf16>
    %68 = arith.index_cast %c1_i32 : i32 to index
    %c0_26 = arith.constant 0 : index
    %c0_27 = arith.constant 0 : index
    %69 = vector.load %arg7[%68, %c0_26, %c0_27] : memref<8x2x32xbf16, #tpu.memory_space<vmem>>, vector<1x2x32xbf16>
    %70 = vector.shape_cast %69 : vector<1x2x32xbf16> to vector<2x32xbf16>
    %71 = vector.shape_cast %67 : vector<2x32xbf16> to vector<1x2x32xbf16>
    tpu.vector_store %arg7[%68, %c0_26, %c0_27], %71 {strides = array<i32>} : memref<8x2x32xbf16, #tpu.memory_space<vmem>>, vector<1x2x32xbf16>,
    %c2_i32 = arith.constant 2 : i32
    %72 = arith.index_cast %c2_i32 : i32 to index
    %c0_28 = arith.constant 0 : index
    %c0_29 = arith.constant 0 : index
    %73 = vector.load %arg1[%72, %c0_28, %c0_29] : memref<8x2x16xbf16, #tpu.memory_space<vmem>>, vector<1x2x16xbf16>
    %74 = vector.shape_cast %73 : vector<1x2x16xbf16> to vector<2x16xbf16>
    %cst_30 = arith.constant dense<0.000000e+00> : vector<2x128xf32>
    %75 = tpu.matmul %74, %3, %cst_30 {dimension_numbers = #tpu.dot_dimension_numbers<[1], [0], [0], [1], [0, 0, 1, 1], [], []>} : vector<2x16xbf16>, vector<16x128xbf16>, vector<2x128xf32> -> vector<2x128xf32>
    %76 = arith.truncf %66 : vector<2x32xf32> to vector<2x32xbf16>
    %cst_31 = arith.constant dense<0.000000e+00> : vector<2x128xf32>
    %77 = tpu.matmul %76, %4, %cst_31 {dimension_numbers = #tpu.dot_dimension_numbers<[1], [0], [0], [1], [0, 0, 1, 1], [], []>} : vector<2x32xbf16>, vector<32x128xbf16>, vector<2x128xf32> -> vector<2x128xf32>
    %78 = arith.addf %75, %77 : vector<2x128xf32>
    %79 = vector.broadcast %5 : vector<1x128xf32> to vector<2x128xf32>
    %80 = arith.addf %78, %79 : vector<2x128xf32>
    %81 = vector.extract_strided_slice %80 {offsets = [0, 0], sizes = [2, 96], strides = [1, 1]} : vector<2x128xf32> to vector<2x96xf32>
    %cst_32 = arith.constant 5.000000e-01 : f32
    %82 = vector.broadcast %cst_32 : f32 to vector<2x96xf32>
    %83 = arith.mulf %82, %81 : vector<2x96xf32>
    %84 = math.tanh %83 : vector<2x96xf32>
    %cst_33 = arith.constant 5.000000e-01 : f32
    %85 = vector.broadcast %cst_33 : f32 to vector<2x96xf32>
    %86 = arith.mulf %85, %84 : vector<2x96xf32>
    %cst_34 = arith.constant 5.000000e-01 : f32
    %87 = vector.broadcast %cst_34 : f32 to vector<2x96xf32>
    %88 = arith.addf %86, %87 : vector<2x96xf32>
    %89 = vector.extract_strided_slice %80 {offsets = [0, 96], sizes = [2, 32], strides = [1, 1]} : vector<2x128xf32> to vector<2x32xf32>
    %90 = math.tanh %89 : vector<2x32xf32>
    %91 = vector.extract_strided_slice %88 {offsets = [0, 0], sizes = [2, 32], strides = [1, 1]} : vector<2x96xf32> to vector<2x32xf32>
    %92 = vector.extract_strided_slice %88 {offsets = [0, 32], sizes = [2, 32], strides = [1, 1]} : vector<2x96xf32> to vector<2x32xf32>
    %93 = vector.extract_strided_slice %88 {offsets = [0, 64], sizes = [2, 32], strides = [1, 1]} : vector<2x96xf32> to vector<2x32xf32>
    %94 = arith.mulf %92, %64 : vector<2x32xf32>
    %95 = arith.mulf %91, %90 : vector<2x32xf32>
    %96 = arith.addf %94, %95 : vector<2x32xf32>
    %97 = math.tanh %96 : vector<2x32xf32>
    %98 = arith.mulf %93, %97 : vector<2x32xf32>
    %99 = arith.truncf %98 : vector<2x32xf32> to vector<2x32xbf16>
    %100 = arith.index_cast %c2_i32 : i32 to index
    %c0_35 = arith.constant 0 : index
    %c0_36 = arith.constant 0 : index
    %101 = vector.load %arg7[%100, %c0_35, %c0_36] : memref<8x2x32xbf16, #tpu.memory_space<vmem>>, vector<1x2x32xbf16>
    %102 = vector.shape_cast %101 : vector<1x2x32xbf16> to vector<2x32xbf16>
    %103 = vector.shape_cast %99 : vector<2x32xbf16> to vector<1x2x32xbf16>
    tpu.vector_store %arg7[%100, %c0_35, %c0_36], %103 {strides = array<i32>} : memref<8x2x32xbf16, #tpu.memory_space<vmem>>, vector<1x2x32xbf16>,
    %c3_i32 = arith.constant 3 : i32
    %104 = arith.index_cast %c3_i32 : i32 to index
    %c0_37 = arith.constant 0 : index
    %c0_38 = arith.constant 0 : index
    %105 = vector.load %arg1[%104, %c0_37, %c0_38] : memref<8x2x16xbf16, #tpu.memory_space<vmem>>, vector<1x2x16xbf16>
    %106 = vector.shape_cast %105 : vector<1x2x16xbf16> to vector<2x16xbf16>
    %cst_39 = arith.constant dense<0.000000e+00> : vector<2x128xf32>
    %107 = tpu.matmul %106, %3, %cst_39 {dimension_numbers = #tpu.dot_dimension_numbers<[1], [0], [0], [1], [0, 0, 1, 1], [], []>} : vector<2x16xbf16>, vector<16x128xbf16>, vector<2x128xf32> -> vector<2x128xf32>
    %108 = arith.truncf %98 : vector<2x32xf32> to vector<2x32xbf16>
    %cst_40 = arith.constant dense<0.000000e+00> : vector<2x128xf32>
    %109 = tpu.matmul %108, %4, %cst_40 {dimension_numbers = #tpu.dot_dimension_numbers<[1], [0], [0], [1], [0, 0, 1, 1], [], []>} : vector<2x32xbf16>, vector<32x128xbf16>, vector<2x128xf32> -> vector<2x128xf32>
    %110 = arith.addf %107, %109 : vector<2x128xf32>
    %111 = vector.broadcast %5 : vector<1x128xf32> to vector<2x128xf32>
    %112 = arith.addf %110, %111 : vector<2x128xf32>
    %113 = vector.extract_strided_slice %112 {offsets = [0, 0], sizes = [2, 96], strides = [1, 1]} : vector<2x128xf32> to vector<2x96xf32>
    %cst_41 = arith.constant 5.000000e-01 : f32
    %114 = vector.broadcast %cst_41 : f32 to vector<2x96xf32>
    %115 = arith.mulf %114, %113 : vector<2x96xf32>
    %116 = math.tanh %115 : vector<2x96xf32>
    %cst_42 = arith.constant 5.000000e-01 : f32
    %117 = vector.broadcast %cst_42 : f32 to vector<2x96xf32>
    %118 = arith.mulf %117, %116 : vector<2x96xf32>
    %cst_43 = arith.constant 5.000000e-01 : f32
    %119 = vector.broadcast %cst_43 : f32 to vector<2x96xf32>
    %120 = arith.addf %118, %119 : vector<2x96xf32>
    %121 = vector.extract_strided_slice %112 {offsets = [0, 96], sizes = [2, 32], strides = [1, 1]} : vector<2x128xf32> to vector<2x32xf32>
    %122 = math.tanh %121 : vector<2x32xf32>
    %123 = vector.extract_strided_slice %120 {offsets = [0, 0], sizes = [2, 32], strides = [1, 1]} : vector<2x96xf32> to vector<2x32xf32>
    %124 = vector.extract_strided_slice %120 {offsets = [0, 32], sizes = [2, 32], strides = [1, 1]} : vector<2x96xf32> to vector<2x32xf32>
    %125 = vector.extract_strided_slice %120 {offsets = [0, 64], sizes = [2, 32], strides = [1, 1]} : vector<2x96xf32> to vector<2x32xf32>
    %126 = arith.mulf %124, %96 : vector<2x32xf32>
    %127 = arith.mulf %123, %122 : vector<2x32xf32>
    %128 = arith.addf %126, %127 : vector<2x32xf32>
    %129 = math.tanh %128 : vector<2x32xf32>
    %130 = arith.mulf %125, %129 : vector<2x32xf32>
    %131 = arith.truncf %130 : vector<2x32xf32> to vector<2x32xbf16>
    %132 = arith.index_cast %c3_i32 : i32 to index
    %c0_44 = arith.constant 0 : index
    %c0_45 = arith.constant 0 : index
    %133 = vector.load %arg7[%132, %c0_44, %c0_45] : memref<8x2x32xbf16, #tpu.memory_space<vmem>>, vector<1x2x32xbf16>
    %134 = vector.shape_cast %133 : vector<1x2x32xbf16> to vector<2x32xbf16>
    %135 = vector.shape_cast %131 : vector<2x32xbf16> to vector<1x2x32xbf16>
    tpu.vector_store %arg7[%132, %c0_44, %c0_45], %135 {strides = array<i32>} : memref<8x2x32xbf16, #tpu.memory_space<vmem>>, vector<1x2x32xbf16>,
    %c4_i32 = arith.constant 4 : i32
    %136 = arith.index_cast %c4_i32 : i32 to index
    %c0_46 = arith.constant 0 : index
    %c0_47 = arith.constant 0 : index
    %137 = vector.load %arg1[%136, %c0_46, %c0_47] : memref<8x2x16xbf16, #tpu.memory_space<vmem>>, vector<1x2x16xbf16>
    %138 = vector.shape_cast %137 : vector<1x2x16xbf16> to vector<2x16xbf16>
    %cst_48 = arith.constant dense<0.000000e+00> : vector<2x128xf32>
    %139 = tpu.matmul %138, %3, %cst_48 {dimension_numbers = #tpu.dot_dimension_numbers<[1], [0], [0], [1], [0, 0, 1, 1], [], []>} : vector<2x16xbf16>, vector<16x128xbf16>, vector<2x128xf32> -> vector<2x128xf32>
    %140 = arith.truncf %130 : vector<2x32xf32> to vector<2x32xbf16>
    %cst_49 = arith.constant dense<0.000000e+00> : vector<2x128xf32>
    %141 = tpu.matmul %140, %4, %cst_49 {dimension_numbers = #tpu.dot_dimension_numbers<[1], [0], [0], [1], [0, 0, 1, 1], [], []>} : vector<2x32xbf16>, vector<32x128xbf16>, vector<2x128xf32> -> vector<2x128xf32>
    %142 = arith.addf %139, %141 : vector<2x128xf32>
    %143 = vector.broadcast %5 : vector<1x128xf32> to vector<2x128xf32>
    %144 = arith.addf %142, %143 : vector<2x128xf32>
    %145 = vector.extract_strided_slice %144 {offsets = [0, 0], sizes = [2, 96], strides = [1, 1]} : vector<2x128xf32> to vector<2x96xf32>
    %cst_50 = arith.constant 5.000000e-01 : f32
    %146 = vector.broadcast %cst_50 : f32 to vector<2x96xf32>
    %147 = arith.mulf %146, %145 : vector<2x96xf32>
    %148 = math.tanh %147 : vector<2x96xf32>
    %cst_51 = arith.constant 5.000000e-01 : f32
    %149 = vector.broadcast %cst_51 : f32 to vector<2x96xf32>
    %150 = arith.mulf %149, %148 : vector<2x96xf32>
    %cst_52 = arith.constant 5.000000e-01 : f32
    %151 = vector.broadcast %cst_52 : f32 to vector<2x96xf32>
    %152 = arith.addf %150, %151 : vector<2x96xf32>
    %153 = vector.extract_strided_slice %144 {offsets = [0, 96], sizes = [2, 32], strides = [1, 1]} : vector<2x128xf32> to vector<2x32xf32>
    %154 = math.tanh %153 : vector<2x32xf32>
    %155 = vector.extract_strided_slice %152 {offsets = [0, 0], sizes = [2, 32], strides = [1, 1]} : vector<2x96xf32> to vector<2x32xf32>
    %156 = vector.extract_strided_slice %152 {offsets = [0, 32], sizes = [2, 32], strides = [1, 1]} : vector<2x96xf32> to vector<2x32xf32>
    %157 = vector.extract_strided_slice %152 {offsets = [0, 64], sizes = [2, 32], strides = [1, 1]} : vector<2x96xf32> to vector<2x32xf32>
    %158 = arith.mulf %156, %128 : vector<2x32xf32>
    %159 = arith.mulf %155, %154 : vector<2x32xf32>
    %160 = arith.addf %158, %159 : vector<2x32xf32>
    %161 = math.tanh %160 : vector<2x32xf32>
    %162 = arith.mulf %157, %161 : vector<2x32xf32>
    %163 = arith.truncf %162 : vector<2x32xf32> to vector<2x32xbf16>
    %164 = arith.index_cast %c4_i32 : i32 to index
    %c0_53 = arith.constant 0 : index
    %c0_54 = arith.constant 0 : index
    %165 = vector.load %arg7[%164, %c0_53, %c0_54] : memref<8x2x32xbf16, #tpu.memory_space<vmem>>, vector<1x2x32xbf16>
    %166 = vector.shape_cast %165 : vector<1x2x32xbf16> to vector<2x32xbf16>
    %167 = vector.shape_cast %163 : vector<2x32xbf16> to vector<1x2x32xbf16>
    tpu.vector_store %arg7[%164, %c0_53, %c0_54], %167 {strides = array<i32>} : memref<8x2x32xbf16, #tpu.memory_space<vmem>>, vector<1x2x32xbf16>,
    %c5_i32 = arith.constant 5 : i32
    %168 = arith.index_cast %c5_i32 : i32 to index
    %c0_55 = arith.constant 0 : index
    %c0_56 = arith.constant 0 : index
    %169 = vector.load %arg1[%168, %c0_55, %c0_56] : memref<8x2x16xbf16, #tpu.memory_space<vmem>>, vector<1x2x16xbf16>
    %170 = vector.shape_cast %169 : vector<1x2x16xbf16> to vector<2x16xbf16>
    %cst_57 = arith.constant dense<0.000000e+00> : vector<2x128xf32>
    %171 = tpu.matmul %170, %3, %cst_57 {dimension_numbers = #tpu.dot_dimension_numbers<[1], [0], [0], [1], [0, 0, 1, 1], [], []>} : vector<2x16xbf16>, vector<16x128xbf16>, vector<2x128xf32> -> vector<2x128xf32>
    %172 = arith.truncf %162 : vector<2x32xf32> to vector<2x32xbf16>
    %cst_58 = arith.constant dense<0.000000e+00> : vector<2x128xf32>
    %173 = tpu.matmul %172, %4, %cst_58 {dimension_numbers = #tpu.dot_dimension_numbers<[1], [0], [0], [1], [0, 0, 1, 1], [], []>} : vector<2x32xbf16>, vector<32x128xbf16>, vector<2x128xf32> -> vector<2x128xf32>
    %174 = arith.addf %171, %173 : vector<2x128xf32>
    %175 = vector.broadcast %5 : vector<1x128xf32> to vector<2x128xf32>
    %176 = arith.addf %174, %175 : vector<2x128xf32>
    %177 = vector.extract_strided_slice %176 {offsets = [0, 0], sizes = [2, 96], strides = [1, 1]} : vector<2x128xf32> to vector<2x96xf32>
    %cst_59 = arith.constant 5.000000e-01 : f32
    %178 = vector.broadcast %cst_59 : f32 to vector<2x96xf32>
    %179 = arith.mulf %178, %177 : vector<2x96xf32>
    %180 = math.tanh %179 : vector<2x96xf32>
    %cst_60 = arith.constant 5.000000e-01 : f32
    %181 = vector.broadcast %cst_60 : f32 to vector<2x96xf32>
    %182 = arith.mulf %181, %180 : vector<2x96xf32>
    %cst_61 = arith.constant 5.000000e-01 : f32
    %183 = vector.broadcast %cst_61 : f32 to vector<2x96xf32>
    %184 = arith.addf %182, %183 : vector<2x96xf32>
    %185 = vector.extract_strided_slice %176 {offsets = [0, 96], sizes = [2, 32], strides = [1, 1]} : vector<2x128xf32> to vector<2x32xf32>
    %186 = math.tanh %185 : vector<2x32xf32>
    %187 = vector.extract_strided_slice %184 {offsets = [0, 0], sizes = [2, 32], strides = [1, 1]} : vector<2x96xf32> to vector<2x32xf32>
    %188 = vector.extract_strided_slice %184 {offsets = [0, 32], sizes = [2, 32], strides = [1, 1]} : vector<2x96xf32> to vector<2x32xf32>
    %189 = vector.extract_strided_slice %184 {offsets = [0, 64], sizes = [2, 32], strides = [1, 1]} : vector<2x96xf32> to vector<2x32xf32>
    %190 = arith.mulf %188, %160 : vector<2x32xf32>
    %191 = arith.mulf %187, %186 : vector<2x32xf32>
    %192 = arith.addf %190, %191 : vector<2x32xf32>
    %193 = math.tanh %192 : vector<2x32xf32>
    %194 = arith.mulf %189, %193 : vector<2x32xf32>
    %195 = arith.truncf %194 : vector<2x32xf32> to vector<2x32xbf16>
    %196 = arith.index_cast %c5_i32 : i32 to index
    %c0_62 = arith.constant 0 : index
    %c0_63 = arith.constant 0 : index
    %197 = vector.load %arg7[%196, %c0_62, %c0_63] : memref<8x2x32xbf16, #tpu.memory_space<vmem>>, vector<1x2x32xbf16>
    %198 = vector.shape_cast %197 : vector<1x2x32xbf16> to vector<2x32xbf16>
    %199 = vector.shape_cast %195 : vector<2x32xbf16> to vector<1x2x32xbf16>
    tpu.vector_store %arg7[%196, %c0_62, %c0_63], %199 {strides = array<i32>} : memref<8x2x32xbf16, #tpu.memory_space<vmem>>, vector<1x2x32xbf16>,
    %c6_i32 = arith.constant 6 : i32
    %200 = arith.index_cast %c6_i32 : i32 to index
    %c0_64 = arith.constant 0 : index
    %c0_65 = arith.constant 0 : index
    %201 = vector.load %arg1[%200, %c0_64, %c0_65] : memref<8x2x16xbf16, #tpu.memory_space<vmem>>, vector<1x2x16xbf16>
    %202 = vector.shape_cast %201 : vector<1x2x16xbf16> to vector<2x16xbf16>
    %cst_66 = arith.constant dense<0.000000e+00> : vector<2x128xf32>
    %203 = tpu.matmul %202, %3, %cst_66 {dimension_numbers = #tpu.dot_dimension_numbers<[1], [0], [0], [1], [0, 0, 1, 1], [], []>} : vector<2x16xbf16>, vector<16x128xbf16>, vector<2x128xf32> -> vector<2x128xf32>
    %204 = arith.truncf %194 : vector<2x32xf32> to vector<2x32xbf16>
    %cst_67 = arith.constant dense<0.000000e+00> : vector<2x128xf32>
    %205 = tpu.matmul %204, %4, %cst_67 {dimension_numbers = #tpu.dot_dimension_numbers<[1], [0], [0], [1], [0, 0, 1, 1], [], []>} : vector<2x32xbf16>, vector<32x128xbf16>, vector<2x128xf32> -> vector<2x128xf32>
    %206 = arith.addf %203, %205 : vector<2x128xf32>
    %207 = vector.broadcast %5 : vector<1x128xf32> to vector<2x128xf32>
    %208 = arith.addf %206, %207 : vector<2x128xf32>
    %209 = vector.extract_strided_slice %208 {offsets = [0, 0], sizes = [2, 96], strides = [1, 1]} : vector<2x128xf32> to vector<2x96xf32>
    %cst_68 = arith.constant 5.000000e-01 : f32
    %210 = vector.broadcast %cst_68 : f32 to vector<2x96xf32>
    %211 = arith.mulf %210, %209 : vector<2x96xf32>
    %212 = math.tanh %211 : vector<2x96xf32>
    %cst_69 = arith.constant 5.000000e-01 : f32
    %213 = vector.broadcast %cst_69 : f32 to vector<2x96xf32>
    %214 = arith.mulf %213, %212 : vector<2x96xf32>
    %cst_70 = arith.constant 5.000000e-01 : f32
    %215 = vector.broadcast %cst_70 : f32 to vector<2x96xf32>
    %216 = arith.addf %214, %215 : vector<2x96xf32>
    %217 = vector.extract_strided_slice %208 {offsets = [0, 96], sizes = [2, 32], strides = [1, 1]} : vector<2x128xf32> to vector<2x32xf32>
    %218 = math.tanh %217 : vector<2x32xf32>
    %219 = vector.extract_strided_slice %216 {offsets = [0, 0], sizes = [2, 32], strides = [1, 1]} : vector<2x96xf32> to vector<2x32xf32>
    %220 = vector.extract_strided_slice %216 {offsets = [0, 32], sizes = [2, 32], strides = [1, 1]} : vector<2x96xf32> to vector<2x32xf32>
    %221 = vector.extract_strided_slice %216 {offsets = [0, 64], sizes = [2, 32], strides = [1, 1]} : vector<2x96xf32> to vector<2x32xf32>
    %222 = arith.mulf %220, %192 : vector<2x32xf32>
    %223 = arith.mulf %219, %218 : vector<2x32xf32>
    %224 = arith.addf %222, %223 : vector<2x32xf32>
    %225 = math.tanh %224 : vector<2x32xf32>
    %226 = arith.mulf %221, %225 : vector<2x32xf32>
    %227 = arith.truncf %226 : vector<2x32xf32> to vector<2x32xbf16>
    %228 = arith.index_cast %c6_i32 : i32 to index
    %c0_71 = arith.constant 0 : index
    %c0_72 = arith.constant 0 : index
    %229 = vector.load %arg7[%228, %c0_71, %c0_72] : memref<8x2x32xbf16, #tpu.memory_space<vmem>>, vector<1x2x32xbf16>
    %230 = vector.shape_cast %229 : vector<1x2x32xbf16> to vector<2x32xbf16>
    %231 = vector.shape_cast %227 : vector<2x32xbf16> to vector<1x2x32xbf16>
    tpu.vector_store %arg7[%228, %c0_71, %c0_72], %231 {strides = array<i32>} : memref<8x2x32xbf16, #tpu.memory_space<vmem>>, vector<1x2x32xbf16>,
    %c7_i32 = arith.constant 7 : i32
    %232 = arith.index_cast %c7_i32 : i32 to index
    %c0_73 = arith.constant 0 : index
    %c0_74 = arith.constant 0 : index
    %233 = vector.load %arg1[%232, %c0_73, %c0_74] : memref<8x2x16xbf16, #tpu.memory_space<vmem>>, vector<1x2x16xbf16>
    %234 = vector.shape_cast %233 : vector<1x2x16xbf16> to vector<2x16xbf16>
    %cst_75 = arith.constant dense<0.000000e+00> : vector<2x128xf32>
    %235 = tpu.matmul %234, %3, %cst_75 {dimension_numbers = #tpu.dot_dimension_numbers<[1], [0], [0], [1], [0, 0, 1, 1], [], []>} : vector<2x16xbf16>, vector<16x128xbf16>, vector<2x128xf32> -> vector<2x128xf32>
    %236 = arith.truncf %226 : vector<2x32xf32> to vector<2x32xbf16>
    %cst_76 = arith.constant dense<0.000000e+00> : vector<2x128xf32>
    %237 = tpu.matmul %236, %4, %cst_76 {dimension_numbers = #tpu.dot_dimension_numbers<[1], [0], [0], [1], [0, 0, 1, 1], [], []>} : vector<2x32xbf16>, vector<32x128xbf16>, vector<2x128xf32> -> vector<2x128xf32>
    %238 = arith.addf %235, %237 : vector<2x128xf32>
    %239 = vector.broadcast %5 : vector<1x128xf32> to vector<2x128xf32>
    %240 = arith.addf %238, %239 : vector<2x128xf32>
    %241 = vector.extract_strided_slice %240 {offsets = [0, 0], sizes = [2, 96], strides = [1, 1]} : vector<2x128xf32> to vector<2x96xf32>
    %cst_77 = arith.constant 5.000000e-01 : f32
    %242 = vector.broadcast %cst_77 : f32 to vector<2x96xf32>
    %243 = arith.mulf %242, %241 : vector<2x96xf32>
    %244 = math.tanh %243 : vector<2x96xf32>
    %cst_78 = arith.constant 5.000000e-01 : f32
    %245 = vector.broadcast %cst_78 : f32 to vector<2x96xf32>
    %246 = arith.mulf %245, %244 : vector<2x96xf32>
    %cst_79 = arith.constant 5.000000e-01 : f32
    %247 = vector.broadcast %cst_79 : f32 to vector<2x96xf32>
    %248 = arith.addf %246, %247 : vector<2x96xf32>
    %249 = vector.extract_strided_slice %240 {offsets = [0, 96], sizes = [2, 32], strides = [1, 1]} : vector<2x128xf32> to vector<2x32xf32>
    %250 = math.tanh %249 : vector<2x32xf32>
    %251 = vector.extract_strided_slice %248 {offsets = [0, 0], sizes = [2, 32], strides = [1, 1]} : vector<2x96xf32> to vector<2x32xf32>
    %252 = vector.extract_strided_slice %248 {offsets = [0, 32], sizes = [2, 32], strides = [1, 1]} : vector<2x96xf32> to vector<2x32xf32>
    %253 = vector.extract_strided_slice %248 {offsets = [0, 64], sizes = [2, 32], strides = [1, 1]} : vector<2x96xf32> to vector<2x32xf32>
    %254 = arith.mulf %252, %224 : vector<2x32xf32>
    %255 = arith.mulf %251, %250 : vector<2x32xf32>
    %256 = arith.addf %254, %255 : vector<2x32xf32>
    %257 = math.tanh %256 : vector<2x32xf32>
    %258 = arith.mulf %253, %257 : vector<2x32xf32>
    %259 = arith.truncf %258 : vector<2x32xf32> to vector<2x32xbf16>
    %260 = arith.index_cast %c7_i32 : i32 to index
    %c0_80 = arith.constant 0 : index
    %c0_81 = arith.constant 0 : index
    %261 = vector.load %arg7[%260, %c0_80, %c0_81] : memref<8x2x32xbf16, #tpu.memory_space<vmem>>, vector<1x2x32xbf16>
    %262 = vector.shape_cast %261 : vector<1x2x32xbf16> to vector<2x32xbf16>
    %263 = vector.shape_cast %259 : vector<2x32xbf16> to vector<1x2x32xbf16>
    tpu.vector_store %arg7[%260, %c0_80, %c0_81], %263 {strides = array<i32>} : memref<8x2x32xbf16, #tpu.memory_space<vmem>>, vector<1x2x32xbf16>,
    %c8_i32 = arith.constant 8 : i32
    %c0_82 = arith.constant 0 : index
    %c0_83 = arith.constant 0 : index
    %264 = vector.load %arg10[%c0_82, %c0_83] : memref<2x32xf32, #tpu.memory_space<vmem>>, vector<2x32xf32>
    tpu.vector_store %arg10[%c0_82, %c0_83], %258 {strides = array<i32>} : memref<2x32xf32, #tpu.memory_space<vmem>>, vector<2x32xf32>,
    %c0_84 = arith.constant 0 : index
    %c0_85 = arith.constant 0 : index
    %265 = vector.load %arg11[%c0_84, %c0_85] : memref<2x32xf32, #tpu.memory_space<vmem>>, vector<2x32xf32>
    tpu.vector_store %arg11[%c0_84, %c0_85], %256 {strides = array<i32>} : memref<2x32xf32, #tpu.memory_space<vmem>>, vector<2x32xf32>,
    %c0_i32_86 = arith.constant 0 : i32
    %266 = arith.cmpi eq, %arg0, %c0_i32_86 : i32
    %267 = arith.extui %266 : i1 to i32
    %c0_i32_87 = arith.constant 0 : i32
    %268 = arith.cmpi ne, %267, %c0_i32_87 : i32
    scf.if %268 {
      %c0_88 = arith.constant 0 : index
      %c0_89 = arith.constant 0 : index
      %269 = vector.load %arg8[%c0_88, %c0_89] : memref<2x32xf32, #tpu.memory_space<vmem>>, vector<2x32xf32>
      tpu.vector_store %arg8[%c0_88, %c0_89], %258 {strides = array<i32>} : memref<2x32xf32, #tpu.memory_space<vmem>>, vector<2x32xf32>,
      %c0_90 = arith.constant 0 : index
      %c0_91 = arith.constant 0 : index
      %270 = vector.load %arg9[%c0_90, %c0_91] : memref<2x32xf32, #tpu.memory_space<vmem>>, vector<2x32xf32>
      tpu.vector_store %arg9[%c0_90, %c0_91], %256 {strides = array<i32>} : memref<2x32xf32, #tpu.memory_space<vmem>>, vector<2x32xf32>,
    } else {
    }
    return
  }
  func.func @transform_0(%arg0: i32) -> (i32, i32, i32) {
    %c0_i32 = arith.constant 0 : i32
    %c0_i32_0 = arith.constant 0 : i32
    %c0_i32_1 = arith.constant 0 : i32
    return %arg0, %c0_i32, %c0_i32_0 : i32, i32, i32
  }
  func.func @transform_1(%arg0: i32) -> (i32, i32) {
    %c0_i32 = arith.constant 0 : i32
    %c0_i32_0 = arith.constant 0 : i32
    %c0_i32_1 = arith.constant 0 : i32
    return %c0_i32, %c0_i32_0 : i32, i32
  }
  func.func @transform_2(%arg0: i32) -> (i32, i32) {
    %c0_i32 = arith.constant 0 : i32
    %c0_i32_0 = arith.constant 0 : i32
    %c0_i32_1 = arith.constant 0 : i32
    return %c0_i32, %c0_i32_0 : i32, i32
  }
  func.func @transform_3(%arg0: i32) -> (i32, i32) {
    %c0_i32 = arith.constant 0 : i32
    %c0_i32_0 = arith.constant 0 : i32
    %c0_i32_1 = arith.constant 0 : i32
    return %c0_i32, %c0_i32_0 : i32, i32
  }
  func.func @transform_4(%arg0: i32) -> (i32, i32) {
    %c0_i32 = arith.constant 0 : i32
    %c0_i32_0 = arith.constant 0 : i32
    %c0_i32_1 = arith.constant 0 : i32
    return %c0_i32, %c0_i32_0 : i32, i32
  }
  func.func @transform_5(%arg0: i32) -> (i32, i32) {
    %c0_i32 = arith.constant 0 : i32
    %c0_i32_0 = arith.constant 0 : i32
    %c0_i32_1 = arith.constant 0 : i32
    return %c0_i32, %c0_i32_0 : i32, i32
  }
  func.func @transform_6(%arg0: i32) -> (i32, i32, i32) {
    %c0_i32 = arith.constant 0 : i32
    %c0_i32_0 = arith.constant 0 : i32
    %c0_i32_1 = arith.constant 0 : i32
    return %arg0, %c0_i32, %c0_i32_0 : i32, i32, i32
  }
  func.func @transform_7(%arg0: i32) -> (i32, i32) {
    %c0_i32 = arith.constant 0 : i32
    %c0_i32_0 = arith.constant 0 : i32
    %c0_i32_1 = arith.constant 0 : i32
    return %c0_i32, %c0_i32_0 : i32, i32
  }
  func.func @transform_8(%arg0: i32) -> (i32, i32) {
    %c0_i32 = arith.constant 0 : i32
    %c0_i32_0 = arith.constant 0 : i32
    %c0_i32_1 = arith.constant 0 : i32
    return %c0_i32, %c0_i32_0 : i32, i32
  }
}

</mosaic_0001>

<bundles_post_ra>
// kernel: my_lstm_forward.3
= control target key start
LH: loop header
LB: loop body
LE: loop exit
PB: predicated region body
PF: predicated region fallthrough
CT: control target
= control target key end

     0   :  { %vm32_vm0 = vcmask 254976   ;;  %vm61_vm1 = vcmask 261120   ;;  %s790_s18 = smov 32   ;;  %s791_s19 = smov 64   ;;  %vm139_vm2 = vcmask 1040384   ;;  %vm147_vm3 = vcmask 253952   ;;  %s1072_s1 = inlined_call_operand.vmem [shape: bf16[32,128], index: 1, kind: input, shape index: {}]   ;;  %s1073_s2 = inlined_call_operand.vmem [shape: bf16[32,128], index: 2, kind: input, shape index: {}]   ;;  %s1074_s4 = inlined_call_operand.vmem [shape: f32[2,32], index: 4, kind: input, shape index: {}]   ;;  %s1075_s0 = inlined_call_operand.vmem [shape: bf16[8,2,32], index: 0, kind: input, shape index: {}]   ;;  %s1076_s3 = inlined_call_operand.vmem [shape: f32[1,128], index: 3, kind: input, shape index: {}]   ;;  %s1077_s5 = inlined_call_operand.vmem [shape: f32[2,32], index: 5, kind: input, shape index: {}]   ;;  %s1078_s6 = inlined_call_operand.vmem [shape: bf16[8,2,32], index: 6, kind: output, shape index: {0}]   ;;  %s1079_s8 = inlined_call_operand.vmem [shape: f32[2,32], index: 8, kind: output, shape index: {2}]   ;;  %s1080_s7 = inlined_call_operand.vmem [shape: f32[2,32], index: 7, kind: output, shape index: {1}]  }
   0x1   :  { %v841_v0 = vld [vmem:[%s1072_s1 + $0x8] sm:$0xff]  ;;  %v31_v2 = vld [vmem:[%s1074_s4] sm:$0x3]  ;;  %v710_v53 = vld [vmem:[%s1075_s0 + $0x2] sm:$0x1]  ;;  %s792_s4 = smov 96  }
   0x2   :  { %v846_v1 = vld [vmem:[%s1073_s2 + $0x8] sm:$0xff]  ;;  %99 = vmatpush.bf16.msra.mxu1 %v841_v0  ;;  %v856_v3 = vld [vmem:[%s1072_s1] sm:$0xff]  ;;  %33 = vst.msk [vmem:[#allocation2] sm:$0x3] %vm32_vm0, %v31_v2  ;;  %180 = vmatpush.bf16.msra.mxu3 %v841_v0 }
   0x3   :  { %71 = vmatpush.bf16.msra.mxu0 %v846_v1  ;;  %v861_v4 = vld [vmem:[%s1073_s2] sm:$0xff]  ;;  %164 = vmatpush.bf16.msra.mxu2 %v846_v1 }
   0x4   :  { %v47_v5 = vld [vmem:[%s1075_s0] sm:$0x1]  ;;  %v706_v29 = vld [vmem:[%s1075_s0 + $0x1] sm:$0x1] }
   0x5   :  { %v34_v8 = vld [vmem:[%s1077_s5] sm:$0x3] }
   0x6   :  { %100 = vmatpush.bf16.msra.mxu1 %v856_v3  ;;  %181 = vmatpush.bf16.msra.mxu3 %v856_v3  ;;  %35 = vst.msk [vmem:[#allocation3] sm:$0x3] %vm32_vm0, %v34_v8  ;;  %v894_v10 = vld [vmem:[%s1076_s3] ss:$0 sm:$0xff] }
   0x7   :  { %72 = vmatpush.bf16.msra.mxu0 %v861_v4  ;;  %165 = vmatpush.bf16.msra.mxu2 %v861_v4 }
   0x9   :  { %705 = vmatmul.msk.bf16.vlgmr.msra.gmra.mxu1 %vm61_vm1, %v47_v5  ;;  %v45_v6 = vld [vmem:[#allocation2] sm:$0x3]  ;;  %708 = vmatmul.msk.bf16.vlgmr.msra.gmra.mxu3 %vm61_vm1, %v706_v29 }
   0xa   :  { %253 = vmatpush.bf16.msrb.mxu1 %v841_v0  ;;  %v48_v7 = vpack.c.bf16 %v45_v6, %v45_v6  ;;  %326 = vmatpush.bf16.msrb.mxu3 %v841_v0 }
   0xb   :  { %237 = vmatpush.bf16.msrb.mxu0 %v846_v1  ;;  %310 = vmatpush.bf16.msrb.mxu2 %v846_v1 }
   0xc   :  { %696 = vmatmul.msk.bf16.vlgmr.msra.gmra.mxu0 %vm61_vm1, %v48_v7 }
   0xd   :  { %v46_v17 = vld [vmem:[#allocation3] sm:$0x3] }
   0xe   :  { %254 = vmatpush.bf16.msrb.mxu1 %v856_v3  ;;  %327 = vmatpush.bf16.msrb.mxu3 %v856_v3 }
   0xf   :  { %238 = vmatpush.bf16.msrb.mxu0 %v861_v4  ;;  %311 = vmatpush.bf16.msrb.mxu2 %v861_v4 }
  0x12   :  { %399 = vmatpush.bf16.msra.mxu1 %v841_v0  ;;  %472 = vmatpush.bf16.msra.mxu3 %v841_v0 }
  0x13   :  { %383 = vmatpush.bf16.msra.mxu0 %v846_v1 }
  0x16   :  { %400 = vmatpush.bf16.msra.mxu1 %v856_v3  ;;  %473 = vmatpush.bf16.msra.mxu3 %v856_v3 }
  0x17   :  { %384 = vmatpush.bf16.msra.mxu0 %v861_v4 }
  0x19   :  { %712 = vmatmul.msk.bf16.vlgmr.msrb.gmra.mxu1 %vm61_vm1, %v710_v53 }
  0x1a   :  { %545 = vmatpush.bf16.msrb.mxu1 %v841_v0 }
  0x1e   :  { %546 = vmatpush.bf16.msrb.mxu1 %v856_v3 }
  0x86   :  { %v102_v9 = vpop.f32.mrf.mxu1 }
  0x89   :  { %v74_v11 = vpop.f32.mrf.mxu0 }
  0x8a   :  { %v103_v12 = vadd.f32 %v102_v9, %v74_v11 }
  0x8c   :  { %v109_v13 = vadd.f32 %v894_v10, %v103_v12  ;;  %v183_v36 = vpop.f32.mrf.mxu3 }
  0x8e   :  { %742 = vtanh.f32 %v109_v13  ;;  %v104_v14 = vpop.f32.mrf.mxu1  ;;  %v110_v18 = vmul.f32 0.5, %v109_v13 }
  0x90   :  { %744 = vtanh.f32 %v110_v18  ;;  %v714_v18 = vld [vmem:[%s1075_s0 + $0x3] sm:$0x1] }
  0x91   :  { %v76_v15 = vpop.f32.mrf.mxu0  ;;  %716 = vmatmul.msk.bf16.vlgmr.msrb.gmra.mxu3 %vm61_vm1, %v714_v18 }
  0x92   :  { %618 = vmatpush.bf16.msrb.mxu3 %v841_v0 }
  0x94   :  { %v743_v16 = vpop.eup %742  ;;  %v185_v37 = vpop.f32.mrf.mxu3 }
  0x95   :  { %121 = vrot.lane.b32.xlu0 %v743_v16, %s790_s18 }
  0x96   :  { %v745_v19 = vpop.eup %744  ;;  %v256_v60 = vpop.f32.mrf.mxu1  ;;  %619 = vmatpush.bf16.msrb.mxu3 %v856_v3 }
  0x97   :  { %v112_v20 = vmul.f32 0.5, %v745_v19 }
  0x99   :  { %v113_v21 = vadd.f32 0.5, %v112_v20 }
  0x9d   :  { %116 = vrot.lane.b32.xlu0 %v46_v17, %s790_s18 }
  0x9e   :  { %v258_v61 = vpop.f32.mrf.mxu1 }
 0x107   :  { %v122_v22 = vpop.permute.xlu0 %121 }
 0x108   :  { %v124_v23 = vmul.f32 %v122_v22, %v113_v21 }
 0x10a   :  { %126 = vrot.lane.b32.xlu1 %v124_v23, %s790_s18 }
 0x10f   :  { %v117_v24 = vpop.permute.xlu0 %116 }
 0x110   :  { %v119_v25 = vmul.f32 %v117_v24, %v113_v21 }
 0x114   :  { %v329_v24 = vpop.f32.mrf.mxu3 }
 0x17c   :  { %v127_v26 = vpop.permute.xlu1 %126 }
 0x17d   :  { %v129_v27 = vadd.f32 %v127_v26, %v119_v25  ;;  %v331_v25 = vpop.f32.mrf.mxu3 }
 0x17f   :  { %746 = vtanh.f32 %v129_v27 }
 0x185   :  { %v747_v28 = vpop.eup %746 }
 0x186   :  { %132 = vrot.lane.b32.xlu1 %v747_v28, %s790_s18 }
 0x1f8   :  { %v133_v30 = vpop.permute.xlu1 %132 }
 0x1f9   :  { %v135_v31 = vmul.f32 %v133_v30, %v113_v21 }
 0x1fb   :  { %v907_v32 = vpack.c.bf16 %v135_v31, %v135_v31 }
 0x1fd   :  { %v151_v33 = vunpack.c.l.b16 %v907_v32 }
 0x1ff   :  { %v152_v34 = vpack.c.b16 %v151_v33, %v151_v33 }
 0x201   :  { %153 = vrot.lane.b32.xlu2 %v152_v34, %s791_s19 }
 0x25b   :  { %v154_v35 = vpop.permute.xlu2 %153 }
 0x25c   :  { %707 = vmatmul.msk.bf16.vlgmr.msra.gmra.mxu2 %vm61_vm1, %v154_v35 }
 0x25d   :  { %456 = vmatpush.bf16.msra.mxu2 %v846_v1 }
 0x261   :  { %457 = vmatpush.bf16.msra.mxu2 %v861_v4 }
 0x2df   :  { %v167_v38 = vpop.f32.mrf.mxu2 }
 0x2e0   :  { %v184_v39 = vadd.f32 %v183_v36, %v167_v38 }
 0x2e2   :  { %v187_v40 = vadd.f32 %v894_v10, %v184_v39  ;;  %v718_v39 = vld [vmem:[%s1075_s0 + $0x4] sm:$0x1] }
 0x2e3   :  { %720 = vmatmul.msk.bf16.vlgmr.msra.gmra.mxu1 %vm61_vm1, %v718_v39 }
 0x2e4   :  { %748 = vtanh.f32 %v187_v40  ;;  %v188_v43 = vmul.f32 0.5, %v187_v40 }
 0x2e6   :  { %750 = vtanh.f32 %v188_v43 }
 0x2e7   :  { %v169_v41 = vpop.f32.mrf.mxu2 }
 0x2ea   :  { %v749_v42 = vpop.eup %748 }
 0x2eb   :  { %195 = vrot.lane.b32.xlu2 %v749_v42, %s790_s18 }
 0x2ec   :  { %v751_v44 = vpop.eup %750 }
 0x2ed   :  { %v190_v45 = vmul.f32 0.5, %v751_v44 }
 0x2ef   :  { %v191_v46 = vadd.f32 0.5, %v190_v45 }
 0x2f1   :  { %v193_v49 = vmul.f32 %v191_v46, %v129_v27 }
 0x345   :  { %v196_v47 = vpop.permute.xlu2 %195 }
 0x346   :  { %v198_v48 = vmul.f32 %v196_v47, %v191_v46 }
 0x348   :  { %200 = vrot.lane.b32.xlu0 %v198_v48, %s790_s18 }
 0x360   :  { %v402_v45 = vpop.f32.mrf.mxu1 }
 0x3ba   :  { %v201_v50 = vpop.permute.xlu0 %200 }
 0x3bb   :  { %v203_v51 = vadd.f32 %v201_v50, %v193_v49 }
 0x3bd   :  { %752 = vtanh.f32 %v203_v51 }
 0x3c3   :  { %v753_v52 = vpop.eup %752 }
 0x3c4   :  { %206 = vrot.lane.b32.xlu1 %v753_v52, %s790_s18 }
 0x436   :  { %v207_v54 = vpop.permute.xlu1 %206 }
 0x437   :  { %v209_v55 = vmul.f32 %v207_v54, %v191_v46  ;;  %v404_v46 = vpop.f32.mrf.mxu1 }
 0x439   :  { %v924_v56 = vpack.c.bf16 %v209_v55, %v209_v55 }
 0x43b   :  { %v224_v57 = vunpack.c.l.b16 %v924_v56 }
 0x43d   :  { %v225_v58 = vpack.c.b16 %v224_v57, %v224_v57 }
 0x43f   :  { %226 = vrot.lane.b32.xlu2 %v225_v58, %s791_s19 }
 0x499   :  { %v227_v59 = vpop.permute.xlu2 %226 }
 0x49a   :  { %711 = vmatmul.msk.bf16.vlgmr.msrb.gmra.mxu0 %vm61_vm1, %v227_v59 }
 0x49b   :  { %529 = vmatpush.bf16.msrb.mxu0 %v846_v1 }
 0x49f   :  { %530 = vmatpush.bf16.msrb.mxu0 %v861_v4 }
 0x517   :  { %v240_v62 = vpop.f32.mrf.mxu0 }
 0x518   :  { %v257_v63 = vadd.f32 %v256_v60, %v240_v62 }
 0x51a   :  { %v260_v2 = vadd.f32 %v894_v10, %v257_v63 }
 0x51c   :  { %754 = vtanh.f32 %v260_v2  ;;  %v261_v7 = vmul.f32 0.5, %v260_v2  ;;  %v722_v2 = vld [vmem:[%s1075_s0 + $0x5] sm:$0x1] }
 0x51d   :  { %724 = vmatmul.msk.bf16.vlgmr.msra.gmra.mxu3 %vm61_vm1, %v722_v2 }
 0x51e   :  { %756 = vtanh.f32 %v261_v7 }
 0x51f   :  { %v242_v5 = vpop.f32.mrf.mxu0 }
 0x522   :  { %v755_v6 = vpop.eup %754 }
 0x523   :  { %268 = vrot.lane.b32.xlu0 %v755_v6, %s790_s18 }
 0x524   :  { %v757_v8 = vpop.eup %756 }
 0x525   :  { %v263_v9 = vmul.f32 0.5, %v757_v8 }
 0x527   :  { %v264_v11 = vadd.f32 0.5, %v263_v9 }
 0x529   :  { %v266_v14 = vmul.f32 %v264_v11, %v203_v51 }
 0x595   :  { %v269_v12 = vpop.permute.xlu0 %268 }
 0x596   :  { %v271_v13 = vmul.f32 %v269_v12, %v264_v11 }
 0x598   :  { %273 = vrot.lane.b32.xlu1 %v271_v13, %s790_s18 }
 0x5a0   :  { %v475_v12 = vpop.f32.mrf.mxu3 }
 0x5a8   :  { %v477_v13 = vpop.f32.mrf.mxu3 }
 0x60a   :  { %v274_v15 = vpop.permute.xlu1 %273 }
 0x60b   :  { %v276_v16 = vadd.f32 %v274_v15, %v266_v14 }
 0x60d   :  { %758 = vtanh.f32 %v276_v16 }
 0x613   :  { %v759_v17 = vpop.eup %758 }
 0x614   :  { %279 = vrot.lane.b32.xlu2 %v759_v17, %s790_s18 }
 0x66e   :  { %v280_v19 = vpop.permute.xlu2 %279 }
 0x66f   :  { %v282_v20 = vmul.f32 %v280_v19, %v264_v11 }
 0x671   :  { %v941_v21 = vpack.c.bf16 %v282_v20, %v282_v20 }
 0x673   :  { %v297_v22 = vunpack.c.l.b16 %v941_v21 }
 0x675   :  { %v298_v23 = vpack.c.b16 %v297_v22, %v297_v22 }
 0x677   :  { %299 = vrot.lane.b32.xlu0 %v298_v23, %s791_s19 }
 0x6e9   :  { %v300_v26 = vpop.permute.xlu0 %299 }
 0x6ea   :  { %715 = vmatmul.msk.bf16.vlgmr.msrb.gmra.mxu2 %vm61_vm1, %v300_v26 }
 0x6eb   :  { %602 = vmatpush.bf16.msrb.mxu2 %v846_v1 }
 0x6ef   :  { %603 = vmatpush.bf16.msrb.mxu2 %v861_v4 }
 0x76d   :  { %v313_v0 = vpop.f32.mrf.mxu2 }
 0x76e   :  { %v330_v3 = vadd.f32 %v329_v24, %v313_v0 }
 0x770   :  { %v333_v27 = vadd.f32 %v894_v10, %v330_v3 }
 0x772   :  { %760 = vtanh.f32 %v333_v27  ;;  %v334_v30 = vmul.f32 0.5, %v333_v27 }
 0x774   :  { %762 = vtanh.f32 %v334_v30 }
 0x775   :  { %v315_v28 = vpop.f32.mrf.mxu2 }
 0x776   :  { %v726_v28 = vld [vmem:[%s1075_s0 + $0x6] sm:$0x1] }
 0x777   :  { %728 = vmatmul.msk.bf16.vlgmr.msrb.gmra.mxu1 %vm61_vm1, %v726_v28 }
 0x778   :  { %v761_v29 = vpop.eup %760 }
 0x779   :  { %341 = vrot.lane.b32.xlu1 %v761_v29, %s790_s18 }
 0x77a   :  { %v763_v31 = vpop.eup %762 }
 0x77b   :  { %v336_v33 = vmul.f32 0.5, %v763_v31 }
 0x77d   :  { %v337_v34 = vadd.f32 0.5, %v336_v33 }
 0x77f   :  { %v339_v1 = vmul.f32 %v337_v34, %v276_v16 }
 0x7eb   :  { %v342_v35 = vpop.permute.xlu1 %341 }
 0x7ec   :  { %v344_v36 = vmul.f32 %v342_v35, %v337_v34 }
 0x7ee   :  { %346 = vrot.lane.b32.xlu2 %v344_v36, %s790_s18 }
 0x7f4   :  { %v548_v35 = vpop.f32.mrf.mxu1 }
 0x7fc   :  { %v550_v36 = vpop.f32.mrf.mxu1 }
 0x848   :  { %v347_v4 = vpop.permute.xlu2 %346 }
 0x849   :  { %v349_v37 = vadd.f32 %v347_v4, %v339_v1 }
 0x84b   :  { %764 = vtanh.f32 %v349_v37 }
 0x851   :  { %v765_v38 = vpop.eup %764 }
 0x852   :  { %352 = vrot.lane.b32.xlu0 %v765_v38, %s790_s18 }
 0x8c4   :  { %v353_v40 = vpop.permute.xlu0 %352 }
 0x8c5   :  { %v355_v41 = vmul.f32 %v353_v40, %v337_v34 }
 0x8c7   :  { %v956_v42 = vpack.c.bf16 %v355_v41, %v355_v41 }
 0x8c9   :  { %v370_v43 = vunpack.c.l.b16 %v956_v42 }
 0x8cb   :  { %v371_v44 = vpack.c.b16 %v370_v43, %v370_v43 }
 0x8cd   :  { %372 = vrot.lane.b32.xlu1 %v371_v44, %s791_s19 }
 0x93f   :  { %v373_v47 = vpop.permute.xlu1 %372 }
 0x940   :  { %719 = vmatmul.msk.bf16.vlgmr.msra.gmra.mxu0 %vm61_vm1, %v373_v47 }
 0x9bd   :  { %v386_v48 = vpop.f32.mrf.mxu0 }
 0x9be   :  { %v403_v49 = vadd.f32 %v402_v45, %v386_v48 }
 0x9c0   :  { %v406_v50 = vadd.f32 %v894_v10, %v403_v49 }
 0x9c2   :  { %766 = vtanh.f32 %v406_v50  ;;  %v407_v53 = vmul.f32 0.5, %v406_v50 }
 0x9c4   :  { %768 = vtanh.f32 %v407_v53 }
 0x9c5   :  { %v388_v51 = vpop.f32.mrf.mxu0 }
 0x9c8   :  { %v767_v52 = vpop.eup %766 }
 0x9c9   :  { %414 = vrot.lane.b32.xlu2 %v767_v52, %s790_s18  ;;  %v730_v52 = vld [vmem:[%s1075_s0 + $0x7] sm:$0x1] }
 0x9ca   :  { %v769_v54 = vpop.eup %768  ;;  %732 = vmatmul.msk.bf16.vlgmr.msrb.gmra.mxu3 %vm61_vm1, %v730_v52 }
 0x9cb   :  { %v409_v55 = vmul.f32 0.5, %v769_v54 }
 0x9cd   :  { %v410_v57 = vadd.f32 0.5, %v409_v55 }
 0x9cf   :  { %v412_v60 = vmul.f32 %v410_v57, %v349_v37 }
 0xa23   :  { %v415_v58 = vpop.permute.xlu2 %414 }
 0xa24   :  { %v417_v59 = vmul.f32 %v415_v58, %v410_v57 }
 0xa26   :  { %419 = vrot.lane.b32.xlu0 %v417_v59, %s790_s18 }
 0xa4d   :  { %v621_v59 = vpop.f32.mrf.mxu3 }
 0xa98   :  { %v420_v61 = vpop.permute.xlu0 %419 }
 0xa99   :  { %v422_v62 = vadd.f32 %v420_v61, %v412_v60  ;;  %v623_v60 = vpop.f32.mrf.mxu3 }
 0xa9b   :  { %770 = vtanh.f32 %v422_v62 }
 0xaa1   :  { %v771_v63 = vpop.eup %770 }
 0xaa2   :  { %425 = vrot.lane.b32.xlu1 %v771_v63, %s790_s18 }
 0xb14   :  { %v426_v5 = vpop.permute.xlu1 %425 }
 0xb15   :  { %v428_v6 = vmul.f32 %v426_v5, %v410_v57 }
 0xb17   :  { %v969_v7 = vpack.c.bf16 %v428_v6, %v428_v6 }
 0xb19   :  { %v443_v8 = vunpack.c.l.b16 %v969_v7 }
 0xb1b   :  { %v444_v9 = vpack.c.b16 %v443_v8, %v443_v8  ;;  %v138_v8 = vrot.slane %v907_v32, 3 }
 0xb1d   :  { %445 = vrot.lane.b32.xlu2 %v444_v9, %s791_s19  ;;  %v142_v9 = vsel %vm139_vm2, %v907_v32, %v138_v8 }
 0xb77   :  { %v446_v11 = vpop.permute.xlu2 %445 }
 0xb78   :  { %723 = vmatmul.msk.bf16.vlgmr.msra.gmra.mxu2 %vm61_vm1, %v446_v11  ;;  %v358_v11 = vrot.slane %v956_v42, 3 }
 0xbfb   :  { %v459_v14 = vpop.f32.mrf.mxu2 }
 0xbfc   :  { %v476_v15 = vadd.f32 %v475_v12, %v459_v14  ;;  %v361_v12 = vsel %vm139_vm2, %v956_v42, %v358_v11 }
 0xbfe   :  { %v479_v16 = vadd.f32 %v894_v10, %v476_v15 }
 0xc00   :  { %772 = vtanh.f32 %v479_v16  ;;  %v480_v19 = vmul.f32 0.5, %v479_v16 }
 0xc02   :  { %774 = vtanh.f32 %v480_v19  ;;  %v212_v19 = vrot.slane %v924_v56, 3 }
 0xc03   :  { %v461_v17 = vpop.f32.mrf.mxu2 }
 0xc06   :  { %v773_v18 = vpop.eup %772 }
 0xc07   :  { %487 = vrot.lane.b32.xlu0 %v773_v18, %s790_s18 }
 0xc08   :  { %v775_v20 = vpop.eup %774 }
 0xc09   :  { %v482_v22 = vmul.f32 0.5, %v775_v20  ;;  %v215_v20 = vsel %vm139_vm2, %v924_v56, %v212_v19 }
 0xc0b   :  { %v483_v23 = vadd.f32 0.5, %v482_v22  ;;  %v431_v22 = vrot.slane %v969_v7, 3 }
 0xc0d   :  { %v485_v26 = vmul.f32 %v483_v23, %v422_v62 }
 0xc79   :  { %v488_v24 = vpop.permute.xlu0 %487 }
 0xc7a   :  { %v490_v25 = vmul.f32 %v488_v24, %v483_v23  ;;  %v434_v24 = vsel %vm139_vm2, %v969_v7, %v431_v22  ;;  %v285_v7 = vrot.slane %v941_v21, 3 }
 0xc7c   :  { %492 = vrot.lane.b32.xlu1 %v490_v25, %s790_s18 }
 0xcee   :  { %v493_v0 = vpop.permute.xlu1 %492 }
 0xcef   :  { %v495_v3 = vadd.f32 %v493_v0, %v485_v26 }
 0xcf1   :  { %776 = vtanh.f32 %v495_v3 }
 0xcf7   :  { %v777_v27 = vpop.eup %776 }
 0xcf8   :  { %498 = vrot.lane.b32.xlu2 %v777_v27, %s790_s18 }
 0xd52   :  { %v499_v29 = vpop.permute.xlu2 %498 }
 0xd53   :  { %v501_v30 = vmul.f32 %v499_v29, %v483_v23  ;;  %v288_v29 = vsel %vm139_vm2, %v941_v21, %v285_v7 }
 0xd55   :  { %v982_v31 = vpack.c.bf16 %v501_v30, %v501_v30 }
 0xd57   :  { %v516_v33 = vunpack.c.l.b16 %v982_v31  ;;  %v504_v30 = vrot.slane %v982_v31, 3 }
 0xd59   :  { %v517_v34 = vpack.c.b16 %v516_v33, %v516_v33  ;;  %v507_v33 = vsel %vm139_vm2, %v982_v31, %v504_v30 }
 0xd5b   :  { %518 = vrot.lane.b32.xlu0 %v517_v34, %s791_s19 }
 0xdcd   :  { %v519_v1 = vpop.permute.xlu0 %518 }
 0xdce   :  { %727 = vmatmul.msk.bf16.vlgmr.msrb.gmra.mxu0 %vm61_vm1, %v519_v1 }
 0xe4b   :  { %v532_v4 = vpop.f32.mrf.mxu0 }
 0xe4c   :  { %v549_v37 = vadd.f32 %v548_v35, %v532_v4 }
 0xe4e   :  { %v552_v38 = vadd.f32 %v894_v10, %v549_v37 }
 0xe50   :  { %778 = vtanh.f32 %v552_v38  ;;  %v553_v41 = vmul.f32 0.5, %v552_v38 }
 0xe52   :  { %780 = vtanh.f32 %v553_v41 }
 0xe53   :  { %v534_v39 = vpop.f32.mrf.mxu0 }
 0xe56   :  { %v779_v40 = vpop.eup %778 }
 0xe57   :  { %560 = vrot.lane.b32.xlu1 %v779_v40, %s790_s18 }
 0xe58   :  { %v781_v43 = vpop.eup %780 }
 0xe59   :  { %v555_v44 = vmul.f32 0.5, %v781_v43 }
 0xe5b   :  { %v556_v45 = vadd.f32 0.5, %v555_v44 }
 0xe5d   :  { %v558_v48 = vmul.f32 %v556_v45, %v495_v3 }
 0xec9   :  { %v561_v46 = vpop.permute.xlu1 %560 }
 0xeca   :  { %v563_v47 = vmul.f32 %v561_v46, %v556_v45 }
 0xecc   :  { %565 = vrot.lane.b32.xlu2 %v563_v47, %s790_s18 }
 0xf26   :  { %v566_v49 = vpop.permute.xlu2 %565 }
 0xf27   :  { %v568_v50 = vadd.f32 %v566_v49, %v558_v48 }
 0xf29   :  { %782 = vtanh.f32 %v568_v50 }
 0xf2f   :  { %v783_v51 = vpop.eup %782 }
 0xf30   :  { %571 = vrot.lane.b32.xlu0 %v783_v51, %s790_s18 }
 0xfa2   :  { %v572_v53 = vpop.permute.xlu0 %571 }
 0xfa3   :  { %v574_v54 = vmul.f32 %v572_v53, %v556_v45 }
 0xfa5   :  { %v575_v55 = vpack.c.bf16 %v574_v54, %v574_v54 }
 0xfa7   :  { %v589_v57 = vunpack.c.l.b16 %v575_v55 }
 0xfa9   :  { %v590_v58 = vpack.c.b16 %v589_v57, %v589_v57 }
 0xfab   :  { %591 = vrot.lane.b32.xlu1 %v590_v58, %s791_s19 }
0x101d   :  { %v592_v61 = vpop.permute.xlu1 %591 }
0x101e   :  { %731 = vmatmul.msk.bf16.vlgmr.msrb.gmra.mxu2 %vm61_vm1, %v592_v61 }
0x10a1   :  { %v605_v62 = vpop.f32.mrf.mxu2 }
0x10a2   :  { %v622_v63 = vadd.f32 %v621_v59, %v605_v62 }
0x10a4   :  { %v625_v2 = vadd.f32 %v894_v10, %v622_v63  ;;  %v577_v10 = vrot.slane %v575_v55, 3 }
0x10a6   :  { %784 = vtanh.f32 %v625_v2  ;;  %v580_v13 = vsel %vm139_vm2, %v575_v55, %v577_v10  ;;  %v626_v14 = vmul.f32 0.5, %v625_v2 }
0x10a8   :  { %786 = vtanh.f32 %v626_v14 }
0x10a9   :  { %v607_v5 = vpop.f32.mrf.mxu2 }
0x10ac   :  { %v785_v6 = vpop.eup %784 }
0x10ad   :  { %633 = vrot.lane.b32.xlu2 %v785_v6, %s790_s18 }
0x10ae   :  { %v787_v15 = vpop.eup %786 }
0x10af   :  { %v628_v16 = vmul.f32 0.5, %v787_v15 }
0x10b1   :  { %v629_v17 = vadd.f32 0.5, %v628_v16 }
0x10b3   :  { %v631_v56 = vmul.f32 %v629_v17, %v568_v50 }
0x10b5   :  { %144 = vrot.lane.b32.xlu2 %v142_v9, %s791_s19 }
0x10bd   :  { %363 = vrot.lane.b32.xlu2 %v361_v12, %s791_s19 }
0x10c5   :  { %582 = vrot.lane.b32.xlu2 %v580_v13, %s791_s19 }
0x1107   :  { %v634_v32 = vpop.permute.xlu2 %633 }
0x1108   :  { %v636_v18 = vmul.f32 %v634_v32, %v629_v17 }
0x110a   :  { %638 = vrot.lane.b32.xlu0 %v636_v18, %s790_s18 }
0x110f   :  { %v145_v42 = vpop.permute.xlu2 %144 }
0x1110   :  { %148 = vst.msk [vmem:[%s1078_s6] sm:$0x1] %vm147_vm3, %v145_v42 }
0x1112   :  { %217 = vrot.lane.b32.xlu0 %v215_v20, %s791_s19 }
0x1117   :  { %v364_v23 = vpop.permute.xlu2 %363 }
0x1118   :  { %717 = vst.msk [vmem:[%s1078_s6 + $0x3] sm:$0x1] %vm147_vm3, %v364_v23 }
0x111a   :  { %436 = vrot.lane.b32.xlu0 %v434_v24, %s791_s19 }
0x111f   :  { %v583_v25 = vpop.permute.xlu2 %582 }
0x1120   :  { %729 = vst.msk [vmem:[%s1078_s6 + $0x6] sm:$0x1] %vm147_vm3, %v583_v25 }
0x117c   :  { %v639_v26 = vpop.permute.xlu0 %638 }
0x117d   :  { %v641_v0 = vadd.f32 %v639_v26, %v631_v56 }
0x117f   :  { %788 = vtanh.f32 %v641_v0  ;;  %667 = vrot.lane.b32.xlu2 %v641_v0, %s792_s4 }
0x1184   :  { %v218_v3 = vpop.permute.xlu0 %217 }
0x1185   :  { %v789_v27 = vpop.eup %788  ;;  %709 = vst.msk [vmem:[%s1078_s6 + $0x1] sm:$0x1] %vm147_vm3, %v218_v3 }
0x1186   :  { %644 = vrot.lane.b32.xlu1 %v789_v27, %s790_s18 }
0x118c   :  { %v437_v28 = vpop.permute.xlu0 %436 }
0x118d   :  { %721 = vst.msk [vmem:[%s1078_s6 + $0x4] sm:$0x1] %vm147_vm3, %v437_v28 }
0x118e   :  { %290 = vrot.lane.b32.xlu1 %v288_v29, %s791_s19 }
0x1196   :  { %509 = vrot.lane.b32.xlu1 %v507_v33, %s791_s19 }
0x11d9   :  { %v668_v34 = vpop.permute.xlu2 %667 }
0x11da   :  { %670 = vst.msk [vmem:[#allocation3] sm:$0x3] %vm32_vm0, %v668_v34 }
0x11db   :  { %675 = vst.msk [vmem:[%s1079_s8] sm:$0x3] %vm32_vm0, %v668_v34 }
0x11f8   :  { %v645_v35 = vpop.permute.xlu1 %644 }
0x11f9   :  { %v647_v36 = vmul.f32 %v645_v35, %v629_v17 }
0x11fb   :  { %v648_v21 = vpack.c.bf16 %v647_v36, %v647_v36  ;;  %661 = vrot.lane.b32.xlu1 %v647_v36, %s791_s19 }
0x11fd   :  { %v650_v1 = vrot.slane %v648_v21, 3 }
0x11ff   :  { %v653_v4 = vsel %vm139_vm2, %v648_v21, %v650_v1 }
0x1200   :  { %655 = vrot.lane.b32.xlu0 %v653_v4, %s791_s19  ;;  %v291_v31 = vpop.permute.xlu1 %290 }
0x1201   :  { %713 = vst.msk [vmem:[%s1078_s6 + $0x2] sm:$0x1] %vm147_vm3, %v291_v31 }
0x1208   :  { %v510_v37 = vpop.permute.xlu1 %509 }
0x1209   :  { %725 = vst.msk [vmem:[%s1078_s6 + $0x5] sm:$0x1] %vm147_vm3, %v510_v37 }
0x126d   :  { %v662_v38 = vpop.permute.xlu1 %661 }
0x126e   :  { %665 = vst.msk [vmem:[#allocation2] sm:$0x3] %vm32_vm0, %v662_v38 }
0x126f   :  { %674 = vst.msk [vmem:[%s1080_s7] sm:$0x3] %vm32_vm0, %v662_v38 }
0x1272   :  { %v656_v39 = vpop.permute.xlu0 %655 }
0x1273   :  { %733 = vst.msk [vmem:[%s1078_s6 + $0x7] sm:$0x1] %vm147_vm3, %v656_v39 }

// kernel: my_lstm_forward.2
= control target key start
LH: loop header
LB: loop body
LE: loop exit
PB: predicated region body
PF: predicated region fallthrough
CT: control target
= control target key end

     0   :  { %vm32_vm0 = vcmask 254976   ;;  %vm82_vm1 = vcmask 130048   ;;  %vm59_vm2 = vcmask 261120   ;;  %s778_s16 = smov 32   ;;  %s779_s17 = smov 64   ;;  %vm132_vm3 = vcmask 1040384   ;;  %s1047_s1 = inlined_call_operand.vmem [shape: bf16[16,128], index: 1, kind: input, shape index: {}]   ;;  %s1048_s2 = inlined_call_operand.vmem [shape: bf16[32,128], index: 2, kind: input, shape index: {}]   ;;  %s1049_s0 = inlined_call_operand.vmem [shape: bf16[8,2,16], index: 0, kind: input, shape index: {}]   ;;  %s1050_s4 = inlined_call_operand.vmem [shape: f32[2,32], index: 4, kind: input, shape index: {}]   ;;  %s1051_s3 = inlined_call_operand.vmem [shape: f32[1,128], index: 3, kind: input, shape index: {}]   ;;  %s1052_s5 = inlined_call_operand.vmem [shape: f32[2,32], index: 5, kind: input, shape index: {}]   ;;  %s1053_s6 = inlined_call_operand.vmem [shape: bf16[8,2,32], index: 6, kind: output, shape index: {0}]   ;;  %s1054_s8 = inlined_call_operand.vmem [shape: f32[2,32], index: 8, kind: output, shape index: {2}]   ;;  %s1055_s7 = inlined_call_operand.vmem [shape: f32[2,32], index: 7, kind: output, shape index: {1}]  }
   0x1   :  { %v829_v0 = vld [vmem:[%s1047_s1] sm:$0xff]  ;;  %v834_v1 = vld [vmem:[%s1048_s2 + $0x8] sm:$0xff]  ;;  %vm140_vm4 = vcmask 253952   ;;  %s780_s1 = smov 96  }
   0x2   :  { %v31_v2 = vld [vmem:[%s1050_s4] sm:$0x3]  ;;  %93 = vmatpush.bf16.msra.mxu1 %v829_v0  ;;  %69 = vmatpush.bf16.msra.mxu0 %v834_v1  ;;  %v699_v52 = vld [vmem:[%s1049_s0 + $0x2] sm:$0x1] }
   0x3   :  { %v45_v3 = vld [vmem:[%s1049_s0] sm:$0x1]  ;;  %33 = vst.msk [vmem:[#allocation2] sm:$0x3] %vm32_vm0, %v31_v2  ;;  %174 = vmatpush.bf16.msra.mxu3 %v829_v0  ;;  %157 = vmatpush.bf16.msra.mxu2 %v834_v1  ;;  %v695_v28 = vld [vmem:[%s1049_s0 + $0x1] sm:$0x1] }
   0x4   :  { %v847_v4 = vld [vmem:[%s1048_s2] sm:$0xff] }
   0x5   :  { %694 = vmatmul.msk.bf16.vlgmr.msra.gmra.mxu1 %vm82_vm1, %v45_v3  ;;  %v34_v7 = vld [vmem:[%s1052_s5] sm:$0x3] }
   0x6   :  { %230 = vmatpush.bf16.msrb.mxu1 %v834_v1  ;;  %70 = vmatpush.bf16.msra.mxu0 %v847_v4  ;;  %35 = vst.msk [vmem:[#allocation3] sm:$0x3] %vm32_vm0, %v34_v7  ;;  %v873_v9 = vld [vmem:[%s1051_s3] ss:$0 sm:$0xff] }
   0x7   :  { %247 = vmatpush.bf16.msrb.mxu3 %v829_v0  ;;  %158 = vmatpush.bf16.msra.mxu2 %v847_v4 }
   0x8   :  { %697 = vmatmul.msk.bf16.vlgmr.msra.gmra.mxu3 %vm82_vm1, %v695_v28 }
   0xa   :  { %303 = vmatpush.bf16.msrb.mxu0 %v834_v1  ;;  %231 = vmatpush.bf16.msrb.mxu1 %v847_v4  ;;  %v43_v5 = vld [vmem:[#allocation2] sm:$0x3] }
   0xb   :  { %320 = vmatpush.bf16.msrb.mxu2 %v829_v0  ;;  %v46_v6 = vpack.c.bf16 %v43_v5, %v43_v5  ;;  %393 = vmatpush.bf16.msra.mxu3 %v829_v0 }
   0xd   :  { %689 = vmatmul.msk.bf16.vlgmr.msra.gmra.mxu0 %vm59_vm2, %v46_v6  ;;  %v44_v16 = vld [vmem:[#allocation3] sm:$0x3] }
   0xe   :  { %376 = vmatpush.bf16.msra.mxu1 %v834_v1  ;;  %304 = vmatpush.bf16.msrb.mxu0 %v847_v4 }
  0x12   :  { %377 = vmatpush.bf16.msra.mxu1 %v847_v4  ;;  %449 = vmatpush.bf16.msra.mxu0 %v834_v1 }
  0x16   :  { %450 = vmatpush.bf16.msra.mxu0 %v847_v4 }
  0x18   :  { %701 = vmatmul.msk.bf16.vlgmr.msrb.gmra.mxu3 %vm82_vm1, %v699_v52 }
  0x19   :  { %539 = vmatpush.bf16.msrb.mxu3 %v829_v0 }
  0x82   :  { %v95_v8 = vpop.f32.mrf.mxu1 }
  0x8a   :  { %v72_v10 = vpop.f32.mrf.mxu0  ;;  %v97_v12 = vpop.f32.mrf.mxu1 }
  0x8b   :  { %v96_v11 = vadd.f32 %v95_v8, %v72_v10  ;;  %v176_v35 = vpop.f32.mrf.mxu3 }
  0x8d   :  { %v102_v13 = vadd.f32 %v873_v9, %v96_v11 }
  0x8f   :  { %730 = vtanh.f32 %v102_v13  ;;  %v103_v17 = vmul.f32 0.5, %v102_v13 }
  0x91   :  { %732 = vtanh.f32 %v103_v17 }
  0x92   :  { %v74_v14 = vpop.f32.mrf.mxu0 }
  0x93   :  { %v178_v36 = vpop.f32.mrf.mxu3 }
  0x95   :  { %v731_v15 = vpop.eup %730 }
  0x96   :  { %114 = vrot.lane.b32.xlu0 %v731_v15, %s778_s16 }
  0x97   :  { %v733_v18 = vpop.eup %732 }
  0x98   :  { %v105_v19 = vmul.f32 0.5, %v733_v18 }
  0x9a   :  { %v106_v20 = vadd.f32 0.5, %v105_v19 }
  0x9b   :  { %v249_v59 = vpop.f32.mrf.mxu3 }
  0x9e   :  { %109 = vrot.lane.b32.xlu0 %v44_v16, %s778_s16  ;;  %v703_v16 = vld [vmem:[%s1049_s0 + $0x3] sm:$0x1] }
  0xa3   :  { %v251_v60 = vpop.f32.mrf.mxu3 }
 0x108   :  { %v115_v21 = vpop.permute.xlu0 %114 }
 0x109   :  { %v117_v22 = vmul.f32 %v115_v21, %v106_v20 }
 0x10b   :  { %119 = vrot.lane.b32.xlu1 %v117_v22, %s778_s16 }
 0x110   :  { %v110_v23 = vpop.permute.xlu0 %109 }
 0x111   :  { %v112_v24 = vmul.f32 %v110_v23, %v106_v20 }
 0x17d   :  { %v120_v25 = vpop.permute.xlu1 %119 }
 0x17e   :  { %v122_v26 = vadd.f32 %v120_v25, %v112_v24 }
 0x180   :  { %734 = vtanh.f32 %v122_v26 }
 0x186   :  { %v735_v27 = vpop.eup %734 }
 0x187   :  { %125 = vrot.lane.b32.xlu1 %v735_v27, %s778_s16 }
 0x1f9   :  { %v126_v29 = vpop.permute.xlu1 %125 }
 0x1fa   :  { %v128_v30 = vmul.f32 %v126_v29, %v106_v20 }
 0x1fc   :  { %v885_v31 = vpack.c.bf16 %v128_v30, %v128_v30 }
 0x1fe   :  { %v144_v32 = vunpack.c.l.b16 %v885_v31 }
 0x200   :  { %v145_v33 = vpack.c.b16 %v144_v32, %v144_v32 }
 0x202   :  { %146 = vrot.lane.b32.xlu2 %v145_v33, %s779_s17 }
 0x25c   :  { %v147_v34 = vpop.permute.xlu2 %146 }
 0x25d   :  { %696 = vmatmul.msk.bf16.vlgmr.msra.gmra.mxu2 %vm59_vm2, %v147_v34 }
 0x25e   :  { %466 = vmatpush.bf16.msra.mxu2 %v829_v0 }
 0x26d   :  { %705 = vmatmul.msk.bf16.vlgmr.msrb.gmra.mxu2 %vm82_vm1, %v703_v16 }
 0x26e   :  { %612 = vmatpush.bf16.msrb.mxu2 %v829_v0 }
 0x2e0   :  { %v160_v37 = vpop.f32.mrf.mxu2 }
 0x2e1   :  { %v177_v38 = vadd.f32 %v176_v35, %v160_v37 }
 0x2e3   :  { %v180_v39 = vadd.f32 %v873_v9, %v177_v38  ;;  %v707_v38 = vld [vmem:[%s1049_s0 + $0x4] sm:$0x1] }
 0x2e4   :  { %709 = vmatmul.msk.bf16.vlgmr.msra.gmra.mxu3 %vm82_vm1, %v707_v38 }
 0x2e5   :  { %736 = vtanh.f32 %v180_v39  ;;  %v181_v42 = vmul.f32 0.5, %v180_v39 }
 0x2e7   :  { %738 = vtanh.f32 %v181_v42 }
 0x2e8   :  { %v162_v40 = vpop.f32.mrf.mxu2 }
 0x2eb   :  { %v737_v41 = vpop.eup %736 }
 0x2ec   :  { %188 = vrot.lane.b32.xlu2 %v737_v41, %s778_s16 }
 0x2ed   :  { %v739_v43 = vpop.eup %738 }
 0x2ee   :  { %v183_v44 = vmul.f32 0.5, %v739_v43 }
 0x2f0   :  { %v184_v45 = vadd.f32 0.5, %v183_v44  ;;  %v322_v22 = vpop.f32.mrf.mxu2 }
 0x2f2   :  { %v186_v48 = vmul.f32 %v184_v45, %v122_v26 }
 0x2f8   :  { %v324_v23 = vpop.f32.mrf.mxu2 }
 0x346   :  { %v189_v46 = vpop.permute.xlu2 %188 }
 0x347   :  { %v191_v47 = vmul.f32 %v189_v46, %v184_v45 }
 0x349   :  { %193 = vrot.lane.b32.xlu0 %v191_v47, %s778_s16 }
 0x367   :  { %v395_v44 = vpop.f32.mrf.mxu3 }
 0x3bb   :  { %v194_v49 = vpop.permute.xlu0 %193 }
 0x3bc   :  { %v196_v50 = vadd.f32 %v194_v49, %v186_v48 }
 0x3be   :  { %740 = vtanh.f32 %v196_v50 }
 0x3c4   :  { %v741_v51 = vpop.eup %740 }
 0x3c5   :  { %199 = vrot.lane.b32.xlu1 %v741_v51, %s778_s16 }
 0x437   :  { %v200_v53 = vpop.permute.xlu1 %199 }
 0x438   :  { %v202_v54 = vmul.f32 %v200_v53, %v184_v45  ;;  %v397_v45 = vpop.f32.mrf.mxu3 }
 0x43a   :  { %v900_v55 = vpack.c.bf16 %v202_v54, %v202_v54 }
 0x43c   :  { %v217_v56 = vunpack.c.l.b16 %v900_v55 }
 0x43e   :  { %v218_v57 = vpack.c.b16 %v217_v56, %v217_v56 }
 0x440   :  { %219 = vrot.lane.b32.xlu2 %v218_v57, %s779_s17 }
 0x49a   :  { %v220_v58 = vpop.permute.xlu2 %219 }
 0x49b   :  { %700 = vmatmul.msk.bf16.vlgmr.msrb.gmra.mxu1 %vm59_vm2, %v220_v58 }
 0x49c   :  { %522 = vmatpush.bf16.msrb.mxu1 %v834_v1 }
 0x4a0   :  { %523 = vmatpush.bf16.msrb.mxu1 %v847_v4 }
 0x518   :  { %v233_v61 = vpop.f32.mrf.mxu1 }
 0x519   :  { %v250_v62 = vadd.f32 %v249_v59, %v233_v61 }
 0x51b   :  { %v253_v63 = vadd.f32 %v873_v9, %v250_v62 }
 0x51d   :  { %742 = vtanh.f32 %v253_v63  ;;  %v254_v5 = vmul.f32 0.5, %v253_v63  ;;  %v711_v63 = vld [vmem:[%s1049_s0 + $0x5] sm:$0x1] }
 0x51e   :  { %713 = vmatmul.msk.bf16.vlgmr.msra.gmra.mxu2 %vm82_vm1, %v711_v63 }
 0x51f   :  { %744 = vtanh.f32 %v254_v5 }
 0x520   :  { %v235_v2 = vpop.f32.mrf.mxu1 }
 0x523   :  { %v743_v3 = vpop.eup %742 }
 0x524   :  { %261 = vrot.lane.b32.xlu0 %v743_v3, %s778_s16 }
 0x525   :  { %v745_v6 = vpop.eup %744 }
 0x526   :  { %v256_v7 = vmul.f32 0.5, %v745_v6 }
 0x528   :  { %v257_v8 = vadd.f32 0.5, %v256_v7 }
 0x52a   :  { %v259_v12 = vmul.f32 %v257_v8, %v196_v50 }
 0x596   :  { %v262_v10 = vpop.permute.xlu0 %261 }
 0x597   :  { %v264_v11 = vmul.f32 %v262_v10, %v257_v8 }
 0x599   :  { %266 = vrot.lane.b32.xlu1 %v264_v11, %s778_s16 }
 0x5a1   :  { %v468_v10 = vpop.f32.mrf.mxu2 }
 0x5a9   :  { %v470_v11 = vpop.f32.mrf.mxu2 }
 0x60b   :  { %v267_v13 = vpop.permute.xlu1 %266 }
 0x60c   :  { %v269_v14 = vadd.f32 %v267_v13, %v259_v12 }
 0x60e   :  { %746 = vtanh.f32 %v269_v14 }
 0x614   :  { %v747_v15 = vpop.eup %746 }
 0x615   :  { %272 = vrot.lane.b32.xlu2 %v747_v15, %s778_s16 }
 0x66f   :  { %v273_v17 = vpop.permute.xlu2 %272 }
 0x670   :  { %v275_v18 = vmul.f32 %v273_v17, %v257_v8 }
 0x672   :  { %v916_v19 = vpack.c.bf16 %v275_v18, %v275_v18 }
 0x674   :  { %v290_v20 = vunpack.c.l.b16 %v916_v19 }
 0x676   :  { %v291_v21 = vpack.c.b16 %v290_v20, %v290_v20 }
 0x678   :  { %292 = vrot.lane.b32.xlu0 %v291_v21, %s779_s17 }
 0x6ea   :  { %v293_v24 = vpop.permute.xlu0 %292 }
 0x6eb   :  { %704 = vmatmul.msk.bf16.vlgmr.msrb.gmra.mxu0 %vm59_vm2, %v293_v24 }
 0x6ec   :  { %595 = vmatpush.bf16.msrb.mxu0 %v834_v1 }
 0x6f0   :  { %596 = vmatpush.bf16.msrb.mxu0 %v847_v4 }
 0x768   :  { %v306_v25 = vpop.f32.mrf.mxu0 }
 0x769   :  { %v323_v0 = vadd.f32 %v322_v22, %v306_v25 }
 0x76b   :  { %v326_v26 = vadd.f32 %v873_v9, %v323_v0 }
 0x76d   :  { %748 = vtanh.f32 %v326_v26  ;;  %v327_v29 = vmul.f32 0.5, %v326_v26 }
 0x76f   :  { %750 = vtanh.f32 %v327_v29 }
 0x770   :  { %v308_v27 = vpop.f32.mrf.mxu0 }
 0x771   :  { %v715_v27 = vld [vmem:[%s1049_s0 + $0x6] sm:$0x1] }
 0x772   :  { %717 = vmatmul.msk.bf16.vlgmr.msrb.gmra.mxu3 %vm82_vm1, %v715_v27 }
 0x773   :  { %v749_v28 = vpop.eup %748 }
 0x774   :  { %334 = vrot.lane.b32.xlu1 %v749_v28, %s778_s16 }
 0x775   :  { %v751_v30 = vpop.eup %750 }
 0x776   :  { %v329_v32 = vmul.f32 0.5, %v751_v30 }
 0x778   :  { %v330_v33 = vadd.f32 0.5, %v329_v32 }
 0x77a   :  { %v332_v1 = vmul.f32 %v330_v33, %v269_v14 }
 0x7e6   :  { %v335_v34 = vpop.permute.xlu1 %334 }
 0x7e7   :  { %v337_v35 = vmul.f32 %v335_v34, %v330_v33 }
 0x7e9   :  { %339 = vrot.lane.b32.xlu2 %v337_v35, %s778_s16 }
 0x7f5   :  { %v541_v34 = vpop.f32.mrf.mxu3 }
 0x7fd   :  { %v543_v35 = vpop.f32.mrf.mxu3 }
 0x843   :  { %v340_v4 = vpop.permute.xlu2 %339 }
 0x844   :  { %v342_v36 = vadd.f32 %v340_v4, %v332_v1 }
 0x846   :  { %752 = vtanh.f32 %v342_v36 }
 0x84c   :  { %v753_v37 = vpop.eup %752 }
 0x84d   :  { %345 = vrot.lane.b32.xlu0 %v753_v37, %s778_s16 }
 0x8bf   :  { %v346_v39 = vpop.permute.xlu0 %345 }
 0x8c0   :  { %v348_v40 = vmul.f32 %v346_v39, %v330_v33 }
 0x8c2   :  { %v931_v41 = vpack.c.bf16 %v348_v40, %v348_v40 }
 0x8c4   :  { %v363_v42 = vunpack.c.l.b16 %v931_v41 }
 0x8c6   :  { %v364_v43 = vpack.c.b16 %v363_v42, %v363_v42 }
 0x8c8   :  { %365 = vrot.lane.b32.xlu1 %v364_v43, %s779_s17 }
 0x93a   :  { %v366_v46 = vpop.permute.xlu1 %365 }
 0x93b   :  { %708 = vmatmul.msk.bf16.vlgmr.msra.gmra.mxu1 %vm59_vm2, %v366_v46 }
 0x9b8   :  { %v379_v47 = vpop.f32.mrf.mxu1 }
 0x9b9   :  { %v396_v48 = vadd.f32 %v395_v44, %v379_v47 }
 0x9bb   :  { %v399_v49 = vadd.f32 %v873_v9, %v396_v48 }
 0x9bd   :  { %754 = vtanh.f32 %v399_v49  ;;  %v400_v52 = vmul.f32 0.5, %v399_v49 }
 0x9bf   :  { %756 = vtanh.f32 %v400_v52 }
 0x9c0   :  { %v381_v50 = vpop.f32.mrf.mxu1 }
 0x9c3   :  { %v755_v51 = vpop.eup %754 }
 0x9c4   :  { %407 = vrot.lane.b32.xlu2 %v755_v51, %s778_s16  ;;  %v719_v51 = vld [vmem:[%s1049_s0 + $0x7] sm:$0x1] }
 0x9c5   :  { %v757_v53 = vpop.eup %756  ;;  %721 = vmatmul.msk.bf16.vlgmr.msrb.gmra.mxu2 %vm82_vm1, %v719_v51 }
 0x9c6   :  { %v402_v54 = vmul.f32 0.5, %v757_v53 }
 0x9c8   :  { %v403_v56 = vadd.f32 0.5, %v402_v54 }
 0x9ca   :  { %v405_v59 = vmul.f32 %v403_v56, %v342_v36 }
 0xa1e   :  { %v408_v57 = vpop.permute.xlu2 %407 }
 0xa1f   :  { %v410_v58 = vmul.f32 %v408_v57, %v403_v56 }
 0xa21   :  { %412 = vrot.lane.b32.xlu0 %v410_v58, %s778_s16 }
 0xa48   :  { %v614_v58 = vpop.f32.mrf.mxu2 }
 0xa93   :  { %v413_v60 = vpop.permute.xlu0 %412 }
 0xa94   :  { %v415_v61 = vadd.f32 %v413_v60, %v405_v59  ;;  %v616_v59 = vpop.f32.mrf.mxu2 }
 0xa96   :  { %758 = vtanh.f32 %v415_v61 }
 0xa9c   :  { %v759_v62 = vpop.eup %758 }
 0xa9d   :  { %418 = vrot.lane.b32.xlu1 %v759_v62, %s778_s16 }
 0xb0f   :  { %v419_v2 = vpop.permute.xlu1 %418 }
 0xb10   :  { %v421_v3 = vmul.f32 %v419_v2, %v403_v56 }
 0xb12   :  { %v944_v5 = vpack.c.bf16 %v421_v3, %v421_v3 }
 0xb14   :  { %v436_v6 = vunpack.c.l.b16 %v944_v5 }
 0xb16   :  { %v437_v7 = vpack.c.b16 %v436_v6, %v436_v6  ;;  %v131_v6 = vrot.slane %v885_v31, 3 }
 0xb18   :  { %438 = vrot.lane.b32.xlu2 %v437_v7, %s779_s17  ;;  %v135_v7 = vsel %vm132_vm3, %v885_v31, %v131_v6 }
 0xb72   :  { %v439_v8 = vpop.permute.xlu2 %438 }
 0xb73   :  { %712 = vmatmul.msk.bf16.vlgmr.msra.gmra.mxu0 %vm59_vm2, %v439_v8  ;;  %v351_v8 = vrot.slane %v931_v41, 3 }
 0xbf0   :  { %v452_v12 = vpop.f32.mrf.mxu0 }
 0xbf1   :  { %v469_v13 = vadd.f32 %v468_v10, %v452_v12  ;;  %v354_v10 = vsel %vm132_vm3, %v931_v41, %v351_v8 }
 0xbf3   :  { %v472_v14 = vadd.f32 %v873_v9, %v469_v13 }
 0xbf5   :  { %760 = vtanh.f32 %v472_v14  ;;  %v473_v17 = vmul.f32 0.5, %v472_v14 }
 0xbf7   :  { %762 = vtanh.f32 %v473_v17  ;;  %v205_v17 = vrot.slane %v900_v55, 3 }
 0xbf8   :  { %v454_v15 = vpop.f32.mrf.mxu0 }
 0xbfb   :  { %v761_v16 = vpop.eup %760 }
 0xbfc   :  { %480 = vrot.lane.b32.xlu0 %v761_v16, %s778_s16 }
 0xbfd   :  { %v763_v18 = vpop.eup %762 }
 0xbfe   :  { %v475_v20 = vmul.f32 0.5, %v763_v18  ;;  %v208_v18 = vsel %vm132_vm3, %v900_v55, %v205_v17 }
 0xc00   :  { %v476_v21 = vadd.f32 0.5, %v475_v20  ;;  %v424_v20 = vrot.slane %v944_v5, 3 }
 0xc02   :  { %v478_v24 = vmul.f32 %v476_v21, %v415_v61 }
 0xc6e   :  { %v481_v22 = vpop.permute.xlu0 %480 }
 0xc6f   :  { %v483_v23 = vmul.f32 %v481_v22, %v476_v21  ;;  %v427_v22 = vsel %vm132_vm3, %v944_v5, %v424_v20  ;;  %v278_v5 = vrot.slane %v916_v19, 3 }
 0xc71   :  { %485 = vrot.lane.b32.xlu1 %v483_v23, %s778_s16 }
 0xce3   :  { %v486_v25 = vpop.permute.xlu1 %485 }
 0xce4   :  { %v488_v0 = vadd.f32 %v486_v25, %v478_v24 }
 0xce6   :  { %764 = vtanh.f32 %v488_v0 }
 0xcec   :  { %v765_v26 = vpop.eup %764 }
 0xced   :  { %491 = vrot.lane.b32.xlu2 %v765_v26, %s778_s16 }
 0xd47   :  { %v492_v28 = vpop.permute.xlu2 %491 }
 0xd48   :  { %v494_v29 = vmul.f32 %v492_v28, %v476_v21  ;;  %v281_v28 = vsel %vm132_vm3, %v916_v19, %v278_v5 }
 0xd4a   :  { %v957_v30 = vpack.c.bf16 %v494_v29, %v494_v29 }
 0xd4c   :  { %v509_v32 = vunpack.c.l.b16 %v957_v30  ;;  %v497_v29 = vrot.slane %v957_v30, 3 }
 0xd4e   :  { %v510_v33 = vpack.c.b16 %v509_v32, %v509_v32  ;;  %v500_v32 = vsel %vm132_vm3, %v957_v30, %v497_v29 }
 0xd50   :  { %511 = vrot.lane.b32.xlu0 %v510_v33, %s779_s17 }
 0xdc2   :  { %v512_v1 = vpop.permute.xlu0 %511 }
 0xdc3   :  { %716 = vmatmul.msk.bf16.vlgmr.msrb.gmra.mxu1 %vm59_vm2, %v512_v1 }
 0xe40   :  { %v525_v4 = vpop.f32.mrf.mxu1 }
 0xe41   :  { %v542_v36 = vadd.f32 %v541_v34, %v525_v4 }
 0xe43   :  { %v545_v37 = vadd.f32 %v873_v9, %v542_v36 }
 0xe45   :  { %766 = vtanh.f32 %v545_v37  ;;  %v546_v40 = vmul.f32 0.5, %v545_v37 }
 0xe47   :  { %768 = vtanh.f32 %v546_v40 }
 0xe48   :  { %v527_v38 = vpop.f32.mrf.mxu1 }
 0xe4b   :  { %v767_v39 = vpop.eup %766 }
 0xe4c   :  { %553 = vrot.lane.b32.xlu1 %v767_v39, %s778_s16 }
 0xe4d   :  { %v769_v42 = vpop.eup %768 }
 0xe4e   :  { %v548_v43 = vmul.f32 0.5, %v769_v42 }
 0xe50   :  { %v549_v44 = vadd.f32 0.5, %v548_v43 }
 0xe52   :  { %v551_v47 = vmul.f32 %v549_v44, %v488_v0 }
 0xebe   :  { %v554_v45 = vpop.permute.xlu1 %553 }
 0xebf   :  { %v556_v46 = vmul.f32 %v554_v45, %v549_v44 }
 0xec1   :  { %558 = vrot.lane.b32.xlu2 %v556_v46, %s778_s16 }
 0xf1b   :  { %v559_v48 = vpop.permute.xlu2 %558 }
 0xf1c   :  { %v561_v49 = vadd.f32 %v559_v48, %v551_v47 }
 0xf1e   :  { %770 = vtanh.f32 %v561_v49 }
 0xf24   :  { %v771_v50 = vpop.eup %770 }
 0xf25   :  { %564 = vrot.lane.b32.xlu0 %v771_v50, %s778_s16 }
 0xf97   :  { %v565_v52 = vpop.permute.xlu0 %564 }
 0xf98   :  { %v567_v53 = vmul.f32 %v565_v52, %v549_v44 }
 0xf9a   :  { %v568_v54 = vpack.c.bf16 %v567_v53, %v567_v53 }
 0xf9c   :  { %v582_v56 = vunpack.c.l.b16 %v568_v54 }
 0xf9e   :  { %v583_v57 = vpack.c.b16 %v582_v56, %v582_v56 }
 0xfa0   :  { %584 = vrot.lane.b32.xlu1 %v583_v57, %s779_s17 }
0x1012   :  { %v585_v60 = vpop.permute.xlu1 %584 }
0x1013   :  { %720 = vmatmul.msk.bf16.vlgmr.msrb.gmra.mxu0 %vm59_vm2, %v585_v60 }
0x1090   :  { %v598_v61 = vpop.f32.mrf.mxu0 }
0x1091   :  { %v615_v62 = vadd.f32 %v614_v58, %v598_v61 }
0x1093   :  { %v618_v63 = vadd.f32 %v873_v9, %v615_v62  ;;  %v570_v9 = vrot.slane %v568_v54, 3 }
0x1095   :  { %772 = vtanh.f32 %v618_v63  ;;  %v573_v11 = vsel %vm132_vm3, %v568_v54, %v570_v9  ;;  %v619_v12 = vmul.f32 0.5, %v618_v63 }
0x1097   :  { %774 = vtanh.f32 %v619_v12 }
0x1098   :  { %v600_v2 = vpop.f32.mrf.mxu0 }
0x109b   :  { %v773_v3 = vpop.eup %772 }
0x109c   :  { %626 = vrot.lane.b32.xlu2 %v773_v3, %s778_s16 }
0x109d   :  { %v775_v13 = vpop.eup %774 }
0x109e   :  { %v621_v14 = vmul.f32 0.5, %v775_v13 }
0x10a0   :  { %v622_v15 = vadd.f32 0.5, %v621_v14 }
0x10a2   :  { %v624_v55 = vmul.f32 %v622_v15, %v561_v49 }
0x10a4   :  { %137 = vrot.lane.b32.xlu2 %v135_v7, %s779_s17 }
0x10ac   :  { %356 = vrot.lane.b32.xlu2 %v354_v10, %s779_s17 }
0x10b4   :  { %575 = vrot.lane.b32.xlu2 %v573_v11, %s779_s17 }
0x10f6   :  { %v627_v31 = vpop.permute.xlu2 %626 }
0x10f7   :  { %v629_v16 = vmul.f32 %v627_v31, %v622_v15 }
0x10f9   :  { %631 = vrot.lane.b32.xlu0 %v629_v16, %s778_s16 }
0x10fe   :  { %v138_v41 = vpop.permute.xlu2 %137 }
0x10ff   :  { %141 = vst.msk [vmem:[%s1053_s6] sm:$0x1] %vm140_vm4, %v138_v41 }
0x1101   :  { %210 = vrot.lane.b32.xlu0 %v208_v18, %s779_s17 }
0x1106   :  { %v357_v21 = vpop.permute.xlu2 %356 }
0x1107   :  { %706 = vst.msk [vmem:[%s1053_s6 + $0x3] sm:$0x1] %vm140_vm4, %v357_v21 }
0x1109   :  { %429 = vrot.lane.b32.xlu0 %v427_v22, %s779_s17 }
0x110e   :  { %v576_v23 = vpop.permute.xlu2 %575 }
0x110f   :  { %718 = vst.msk [vmem:[%s1053_s6 + $0x6] sm:$0x1] %vm140_vm4, %v576_v23 }
0x116b   :  { %v632_v24 = vpop.permute.xlu0 %631 }
0x116c   :  { %v634_v25 = vadd.f32 %v632_v24, %v624_v55 }
0x116e   :  { %776 = vtanh.f32 %v634_v25  ;;  %660 = vrot.lane.b32.xlu2 %v634_v25, %s780_s1 }
0x1173   :  { %v211_v0 = vpop.permute.xlu0 %210 }
0x1174   :  { %v777_v26 = vpop.eup %776  ;;  %698 = vst.msk [vmem:[%s1053_s6 + $0x1] sm:$0x1] %vm140_vm4, %v211_v0 }
0x1175   :  { %637 = vrot.lane.b32.xlu1 %v777_v26, %s778_s16 }
0x117b   :  { %v430_v27 = vpop.permute.xlu0 %429 }
0x117c   :  { %710 = vst.msk [vmem:[%s1053_s6 + $0x4] sm:$0x1] %vm140_vm4, %v430_v27 }
0x117d   :  { %283 = vrot.lane.b32.xlu1 %v281_v28, %s779_s17 }
0x1185   :  { %502 = vrot.lane.b32.xlu1 %v500_v32, %s779_s17 }
0x11c8   :  { %v661_v33 = vpop.permute.xlu2 %660 }
0x11c9   :  { %663 = vst.msk [vmem:[#allocation3] sm:$0x3] %vm32_vm0, %v661_v33 }
0x11ca   :  { %668 = vst.msk [vmem:[%s1054_s8] sm:$0x3] %vm32_vm0, %v661_v33 }
0x11e7   :  { %v638_v34 = vpop.permute.xlu1 %637 }
0x11e8   :  { %v640_v35 = vmul.f32 %v638_v34, %v622_v15 }
0x11ea   :  { %v641_v19 = vpack.c.bf16 %v640_v35, %v640_v35  ;;  %654 = vrot.lane.b32.xlu1 %v640_v35, %s779_s17 }
0x11ec   :  { %v643_v1 = vrot.slane %v641_v19, 3 }
0x11ee   :  { %v646_v4 = vsel %vm132_vm3, %v641_v19, %v643_v1 }
0x11ef   :  { %648 = vrot.lane.b32.xlu0 %v646_v4, %s779_s17  ;;  %v284_v30 = vpop.permute.xlu1 %283 }
0x11f0   :  { %702 = vst.msk [vmem:[%s1053_s6 + $0x2] sm:$0x1] %vm140_vm4, %v284_v30 }
0x11f7   :  { %v503_v36 = vpop.permute.xlu1 %502 }
0x11f8   :  { %714 = vst.msk [vmem:[%s1053_s6 + $0x5] sm:$0x1] %vm140_vm4, %v503_v36 }
0x125c   :  { %v655_v37 = vpop.permute.xlu1 %654 }
0x125d   :  { %658 = vst.msk [vmem:[#allocation2] sm:$0x3] %vm32_vm0, %v655_v37 }
0x125e   :  { %667 = vst.msk [vmem:[%s1055_s7] sm:$0x3] %vm32_vm0, %v655_v37 }
0x1261   :  { %v649_v38 = vpop.permute.xlu0 %648 }
0x1262   :  { %722 = vst.msk [vmem:[%s1053_s6 + $0x7] sm:$0x1] %vm140_vm4, %v649_v38 }

</bundles_post_ra>
